<compile_context>
chip_gen: v6e
topology: v6e:2x2x1
jax: 0.10.0
libtpu: 0.0.40
codegen_flags: <defaults>
</compile_context>

<pallas_src>
import jax
import jax.numpy as jnp
from jax.experimental import pallas as pl
from jax.experimental.pallas import tpu as pltpu

# ---- module hyperparameters (mirrors gpt.py) ----
N_EMBD = 384            # n_embd
BLOCK_SIZE = 256        # max sequence length (size of the tril buffer)
HEAD_SIZE = 64          # head_size constructor argument (n_embd // n_head)
HEAD_PAD = 128          # q/k/v projection width padded to one full 128-lane vreg
SCALE = N_EMBD ** -0.5  # reference scales by C**-0.5 where C = n_embd
TQ = 64                 # query rows processed per grid step


# ------------------------------ Pallas kernel ------------------------------

def head_kernel(x_ref, w_ref, o_ref, k_scr, v_scr):
    """One (batch, query-tile) step of the fused causal attention head.

    x_ref: (T, C)            bf16 activations for batch element b (leading dim squeezed)
    w_ref: (C, 3*HEAD_PAD)   bf16 packed [Wq | Wk | Wv], each zero-padded to 128 lanes
    o_ref: (TQ, HEAD_SIZE)   f32 output strip
    k_scr/v_scr: (T, HEAD_PAD) bf16 VMEM scratch, filled at qi == 0, reused after
    """
    qi = pl.program_id(1)
    T, _ = x_ref.shape
    tq = o_ref.shape[0]

    # --- K/V projection once per batch element, reused across all q tiles ---
    @pl.when(qi == 0)
    def _():
        kv = jnp.dot(x_ref[...], w_ref[:, HEAD_PAD:],
                     preferred_element_type=jnp.float32)            # (T, 2*HP) f32 acc
        k_scr[...] = kv[:, :HEAD_PAD].astype(jnp.bfloat16)
        v_scr[...] = kv[:, HEAD_PAD:].astype(jnp.bfloat16)

    # --- Q projection for this TQ-row strip; fold attention scale in here ---
    row0 = pl.multiple_of(qi * tq, tq)
    xq = x_ref[pl.ds(row0, tq), :]                                  # (TQ, C) bf16
    q = jnp.dot(xq, w_ref[:, :HEAD_PAD],
                preferred_element_type=jnp.float32)                 # (TQ, HP) f32
    q = (q * SCALE).astype(jnp.bfloat16)

    # --- scores: 'qd,kd->qk' form avoids materializing a transposed k tile ---
    s = jax.lax.dot_general(q, k_scr[...], (((1,), (1,)), ((), ())),
                            preferred_element_type=jnp.float32)     # (TQ, T) f32
    # (zero-padded feature lanes 64..127 contribute exactly 0 to the contraction)

    # --- causal (tril) mask on global positions + stable f32 softmax ---
    col = jax.lax.broadcasted_iota(jnp.int32, (tq, T), 1)
    row = jax.lax.broadcasted_iota(jnp.int32, (tq, T), 0) + row0
    s = jnp.where(col <= row, s, -jnp.inf)
    s = s - jnp.max(s, axis=-1, keepdims=True)
    p = jnp.exp(s)
    p = p * pl.reciprocal(jnp.sum(p, axis=-1, keepdims=True), approx=True)
    # TODO(synk): attention dropout (p=0.2) omitted — inference/eval identity.

    # --- weighted value sum; padded v lanes are zero, keep only real 64 lanes ---
    out = jnp.dot(p.astype(jnp.bfloat16), v_scr[...],
                  preferred_element_type=jnp.float32)               # (TQ, HP) f32
    o_ref[...] = out[:, :HEAD_SIZE]


# ------------------------------ wrapper ------------------------------

def pack_head_weights(wq, wk, wv):
    """One-off (init-time) packing: [Wq|Wk|Wv], each zero-padded 64->128, bf16."""
    pad = HEAD_PAD - HEAD_SIZE
    w_qkv = jnp.concatenate(
        [jnp.pad(w, ((0, 0), (0, pad))) for w in (wq, wk, wv)], axis=1)  # (C, 3*HP)
    return w_qkv.astype(jnp.bfloat16)


def head_forward(x, w_qkv, *, tq=TQ):
    """x: (B, T, C) float32; w_qkv: packed bf16 (C, 3*HEAD_PAD) from pack_head_weights."""
    B, T, C = x.shape
    assert C == N_EMBD and T <= BLOCK_SIZE and T % tq == 0
    nq = T // tq
    x_bf16 = x.astype(jnp.bfloat16)   # bf16 activations halve DMA + feed the MXU

    return pl.pallas_call(
        head_kernel,
        out_shape=jax.ShapeDtypeStruct((B, T, HEAD_SIZE), jnp.float32),
        grid=(B, nq),
        in_specs=[
            pl.BlockSpec((None, T, C), lambda b, qi: (b, 0, 0)),          # full x per batch
            pl.BlockSpec((C, 3 * HEAD_PAD), lambda b, qi: (0, 0)),        # weights resident
        ],
        out_specs=pl.BlockSpec((None, tq, HEAD_SIZE), lambda b, qi: (b, qi, 0)),
        scratch_shapes=[
            pltpu.VMEM((T, HEAD_PAD), jnp.bfloat16),   # K scratch (per core)
            pltpu.VMEM((T, HEAD_PAD), jnp.bfloat16),   # V scratch (per core)
        ],
        # qi axis is "arbitrary": K/V scratch is carried across q tiles of a
        # batch element; batch axis is "parallel" for megacore sharding.
        compiler_params=pltpu.CompilerParams(
            dimension_semantics=("parallel", "arbitrary")),
    )(x_bf16, w_qkv)


# ------------------------------ reference (plain JAX, f32) ------------------------------

def head_reference(x, wq, wk, wv):
    q = x @ wq
    k = x @ wk
    v = x @ wv
    s = jnp.einsum('btd,bsd->bts', q, k) * SCALE
    T = x.shape[1]
    mask = jnp.tril(jnp.ones((T, T), bool))
    s = jnp.where(mask[None], s, -jnp.inf)
    p = jax.nn.softmax(s, axis=-1)
    return jnp.einsum('bts,bsd->btd', p, v)


# ------------------------------ demo ------------------------------

if __name__ == "__main__":
    key = jax.random.PRNGKey(0)
    kx, kq, kk, kv = jax.random.split(key, 4)

    B, T = 2, BLOCK_SIZE               # T = 256 = block_size; grid = (2, 4)
    x = (0.1 * jax.random.normal(kx, (B, T, N_EMBD))).astype(jnp.float32)
    wq = (0.1 * jax.random.normal(kq, (N_EMBD, HEAD_SIZE))).astype(jnp.float32)
    wk = (0.1 * jax.random.normal(kk, (N_EMBD, HEAD_SIZE))).astype(jnp.float32)
    wv = (0.1 * jax.random.normal(kv, (N_EMBD, HEAD_SIZE))).astype(jnp.float32)

    w_qkv = pack_head_weights(wq, wk, wv)      # init-time, not per-call

    out = jax.jit(head_forward)(x, w_qkv)
    jax.block_until_ready(out)

    assert out.shape == (B, T, HEAD_SIZE)
    assert bool(jnp.all(jnp.isfinite(out)))
    ref = head_reference(x, wq, wk, wv)
    # bf16 MXU operands + approx reciprocal => slightly looser tolerance vs f32 ref.
    assert bool(jnp.allclose(out, ref, rtol=2e-2, atol=2e-3))
    print("KERNEL_OK")
</pallas_src>

<mosaic_0001>
module attributes {stable_mosaic.version = 11 : i64} {
  func.func @head_kernel(%arg0: i32, %arg1: i32, %arg2: memref<1x256x384xbf16, #tpu.memory_space<vmem>>, %arg3: memref<384x384xbf16, #tpu.memory_space<vmem>>, %arg4: memref<1x64x64xf32, #tpu.memory_space<vmem>>, %arg5: memref<256x128xbf16, #tpu.memory_space<vmem>>, %arg6: memref<256x128xbf16, #tpu.memory_space<vmem>>) attributes {dimension_semantics = [#tpu.dimension_semantics<parallel>, #tpu.dimension_semantics<arbitrary>], iteration_bounds = array<i64: 2, 4>, scalar_prefetch = 0 : i64, scratch_operands = 2 : i64, tpu.core_type = #tpu.core_type<tc>, window_params = [{transform_indices = @transform_0, window_bounds = array<i64: 1, 256, 384>}, {pipeline_mode = #tpu.pipeline_mode<synchronous>, transform_indices = @transform_1, window_bounds = array<i64: 384, 384>}, {transform_indices = @transform_2, window_bounds = array<i64: 1, 64, 64>}]} {
    %c0_i32 = arith.constant 0 : i32
    %0 = arith.cmpi eq, %arg1, %c0_i32 : i32
    %1 = arith.extui %0 : i1 to i32
    %c0_i32_0 = arith.constant 0 : i32
    %2 = arith.cmpi ne, %1, %c0_i32_0 : i32
    scf.if %2 {
      %c0_17 = arith.constant 0 : index
      %c0_18 = arith.constant 0 : index
      %c0_19 = arith.constant 0 : index
      %39 = vector.load %arg2[%c0_17, %c0_18, %c0_19] : memref<1x256x384xbf16, #tpu.memory_space<vmem>>, vector<1x256x384xbf16>
      %40 = vector.shape_cast %39 : vector<1x256x384xbf16> to vector<256x384xbf16>
      %c0_20 = arith.constant 0 : index
      %c128 = arith.constant 128 : index
      %41 = vector.load %arg3[%c0_20, %c128] : memref<384x384xbf16, #tpu.memory_space<vmem>>, vector<384x256xbf16>
      %cst_21 = arith.constant dense<0.000000e+00> : vector<256x256xf32>
      %42 = tpu.matmul %40, %41, %cst_21 {dimension_numbers = #tpu.dot_dimension_numbers<[1], [0], [0], [1], [0, 0, 1, 1], [], []>} : vector<256x384xbf16>, vector<384x256xbf16>, vector<256x256xf32> -> vector<256x256xf32>
      %43 = vector.extract_strided_slice %42 {offsets = [0, 0], sizes = [256, 128], strides = [1, 1]} : vector<256x256xf32> to vector<256x128xf32>
      %44 = arith.truncf %43 : vector<256x128xf32> to vector<256x128xbf16>
      %c0_22 = arith.constant 0 : index
      %c0_23 = arith.constant 0 : index
      %45 = vector.load %arg5[%c0_22, %c0_23] : memref<256x128xbf16, #tpu.memory_space<vmem>>, vector<256x128xbf16>
      tpu.vector_store %arg5[%c0_22, %c0_23], %44 {strides = array<i32>} : memref<256x128xbf16, #tpu.memory_space<vmem>>, vector<256x128xbf16>,
      %46 = vector.extract_strided_slice %42 {offsets = [0, 128], sizes = [256, 128], strides = [1, 1]} : vector<256x256xf32> to vector<256x128xf32>
      %47 = arith.truncf %46 : vector<256x128xf32> to vector<256x128xbf16>
      %c0_24 = arith.constant 0 : index
      %c0_25 = arith.constant 0 : index
      %48 = vector.load %arg6[%c0_24, %c0_25] : memref<256x128xbf16, #tpu.memory_space<vmem>>, vector<256x128xbf16>
      tpu.vector_store %arg6[%c0_24, %c0_25], %47 {strides = array<i32>} : memref<256x128xbf16, #tpu.memory_space<vmem>>, vector<256x128xbf16>,
    } else {
    }
    %c64_i32 = arith.constant 64 : i32
    %3 = arith.muli %arg1, %c64_i32 : i32
    %4 = tpu.assume_multiple %3, 64 : i32
    %c0 = arith.constant 0 : index
    %5 = arith.index_cast %4 : i32 to index
    %c0_1 = arith.constant 0 : index
    %6 = vector.load %arg2[%c0, %5, %c0_1] : memref<1x256x384xbf16, #tpu.memory_space<vmem>>, vector<1x64x384xbf16>
    %7 = vector.shape_cast %6 : vector<1x64x384xbf16> to vector<64x384xbf16>
    %c0_2 = arith.constant 0 : index
    %c0_3 = arith.constant 0 : index
    %8 = vector.load %arg3[%c0_2, %c0_3] : memref<384x384xbf16, #tpu.memory_space<vmem>>, vector<384x128xbf16>
    %cst = arith.constant dense<0.000000e+00> : vector<64x128xf32>
    %9 = tpu.matmul %7, %8, %cst {dimension_numbers = #tpu.dot_dimension_numbers<[1], [0], [0], [1], [0, 0, 1, 1], [], []>} : vector<64x384xbf16>, vector<384x128xbf16>, vector<64x128xf32> -> vector<64x128xf32>
    %cst_4 = arith.constant 0.0510310382 : f32
    %10 = vector.broadcast %cst_4 : f32 to vector<64x128xf32>
    %11 = arith.mulf %9, %10 : vector<64x128xf32>
    %12 = arith.truncf %11 : vector<64x128xf32> to vector<64x128xbf16>
    %c0_5 = arith.constant 0 : index
    %c0_6 = arith.constant 0 : index
    %13 = vector.load %arg5[%c0_5, %c0_6] : memref<256x128xbf16, #tpu.memory_space<vmem>>, vector<256x128xbf16>
    %cst_7 = arith.constant dense<0.000000e+00> : vector<64x256xf32>
    %14 = tpu.matmul %12, %13, %cst_7 {dimension_numbers = #tpu.dot_dimension_numbers<[1], [1], [0], [0], [0, 0, 1, 0], [], []>} : vector<64x128xbf16>, vector<256x128xbf16>, vector<64x256xf32> -> vector<64x256xf32>
    %15 = tpu.iota {dimensions = array<i32: 1>} : vector<64x256xi32>
    %16 = tpu.iota {dimensions = array<i32: 0>} : vector<64x256xi32>
    %17 = vector.broadcast %4 : i32 to vector<64x256xi32>
    %18 = arith.addi %16, %17 : vector<64x256xi32>
    %19 = arith.cmpi sle, %15, %18 : vector<64x256xi32>
    %cst_8 = arith.constant 0xFF800000 : f32
    %20 = vector.broadcast %cst_8 : f32 to vector<64x256xf32>
    %21 = arith.select %19, %14, %20 : vector<64x256xi1>, vector<64x256xf32>
    %cst_9 = arith.constant dense<0xFF800000> : vector<64xf32>
    %22 = vector.multi_reduction <maximumf>, %21, %cst_9 [1] : vector<64x256xf32> to vector<64xf32>
    %23 = vector.shape_cast %22 : vector<64xf32> to vector<64x1xf32>
    %24 = vector.broadcast %23 : vector<64x1xf32> to vector<64x256xf32>
    %25 = arith.subf %21, %24 : vector<64x256xf32>
    %26 = math.exp %25 : vector<64x256xf32>
    %cst_10 = arith.constant dense<0.000000e+00> : vector<64xf32>
    %27 = vector.multi_reduction <add>, %26, %cst_10 [1] : vector<64x256xf32> to vector<64xf32>
    %28 = vector.shape_cast %27 : vector<64xf32> to vector<64x1xf32>
    %29 = tpu.reciprocal %28 {approx = true} : vector<64x1xf32> -> vector<64x1xf32>
    %30 = vector.broadcast %29 : vector<64x1xf32> to vector<64x256xf32>
    %31 = arith.mulf %26, %30 : vector<64x256xf32>
    %32 = arith.truncf %31 : vector<64x256xf32> to vector<64x256xbf16>
    %c0_11 = arith.constant 0 : index
    %c0_12 = arith.constant 0 : index
    %33 = vector.load %arg6[%c0_11, %c0_12] : memref<256x128xbf16, #tpu.memory_space<vmem>>, vector<256x128xbf16>
    %cst_13 = arith.constant dense<0.000000e+00> : vector<64x128xf32>
    %34 = tpu.matmul %32, %33, %cst_13 {dimension_numbers = #tpu.dot_dimension_numbers<[1], [0], [0], [1], [0, 0, 1, 1], [], []>} : vector<64x256xbf16>, vector<256x128xbf16>, vector<64x128xf32> -> vector<64x128xf32>
    %35 = vector.extract_strided_slice %34 {offsets = [0, 0], sizes = [64, 64], strides = [1, 1]} : vector<64x128xf32> to vector<64x64xf32>
    %c0_14 = arith.constant 0 : index
    %c0_15 = arith.constant 0 : index
    %c0_16 = arith.constant 0 : index
    %36 = vector.load %arg4[%c0_14, %c0_15, %c0_16] : memref<1x64x64xf32, #tpu.memory_space<vmem>>, vector<1x64x64xf32>
    %37 = vector.shape_cast %36 : vector<1x64x64xf32> to vector<64x64xf32>
    %38 = vector.shape_cast %35 : vector<64x64xf32> to vector<1x64x64xf32>
    tpu.vector_store %arg4[%c0_14, %c0_15, %c0_16], %38 {strides = array<i32>} : memref<1x64x64xf32, #tpu.memory_space<vmem>>, vector<1x64x64xf32>,
    return
  }
  func.func @transform_0(%arg0: i32, %arg1: i32) -> (i32, i32, i32) {
    %c0_i32 = arith.constant 0 : i32
    %c0_i32_0 = arith.constant 0 : i32
    %c0_i32_1 = arith.constant 0 : i32
    return %arg0, %c0_i32, %c0_i32_0 : i32, i32, i32
  }
  func.func @transform_1(%arg0: i32, %arg1: i32) -> (i32, i32) {
    %c0_i32 = arith.constant 0 : i32
    %c0_i32_0 = arith.constant 0 : i32
    %c0_i32_1 = arith.constant 0 : i32
    return %c0_i32, %c0_i32_0 : i32, i32
  }
  func.func @transform_2(%arg0: i32, %arg1: i32) -> (i32, i32, i32) {
    %c0_i32 = arith.constant 0 : i32
    %c0_i32_0 = arith.constant 0 : i32
    return %arg0, %arg1, %c0_i32 : i32, i32, i32
  }
}

</mosaic_0001>

<bundles_post_ra>
// kernel: head_forward.1
= control target key start
LH: loop header
LB: loop body
LE: loop exit
PB: predicated region body
PF: predicated region fallthrough
CT: control target
= control target key end

     0   :  { %s3567_s9 = smov 0   ;;  %s3569_s10 = smov 0   ;;  %s4097_s0 = inlined_call_operand.vmem [shape: bf16[2,256,384], index: 0, kind: input, shape index: {}]   ;;  %s4098_s1 = inlined_call_operand.vmem [shape: bf16[384,384], index: 1, kind: input, shape index: {}]   ;;  %s4099_s2 = inlined_call_operand.vmem [shape: f32[2,256,64], index: 2, kind: output, shape index: {}]  }
   0x1   :  { %s3571_s11 = smov 0   ;;  %s3573_s12 = smov 0  }
   0x2   :  { %s3575_s13 = smov 0  }
   0x3 LB: > { %s21_s14 = sadd.s32 1, %s3541_s11  ;;  %s24_s15 = sadd.s32 1, %s3545_s12  ;;  %s3549_s13 = sphi %s3575_s13, %s12_s13   ;;  %s3545_s12 = sphi %s3573_s12, %s4103_s12   ;;  %s3541_s11 = sphi %s3571_s11, %s4102_s11   ;;  %s3537_s10 = sphi %s3569_s10, %s4101_s10   ;;  %s3533_s9 = sphi %s3567_s9, %s4100_s9  }
   0x4   : > { %p22_p0 = scmp.ge.s32.totalorder %s21_s14, 4  ;;  %p2580_p1 = scmp.ge.s32.totalorder %s3549_s13, 1 }
   0x5   : > { %p126_p2 = scmp.lt.s32.totalorder %s3549_s13, 9 }
   0x6   : > { %s4105_s14 = smov (%p22_p0, %s21_s14), 0  ;;  %s4107_s15 = smov (!%p22_p0, %s24_s15), %s3545_s12 }
   0x7   : > { %p127_p3 = pnand %p2580_p1, %p126_p2  ;;  %p26_p4 = scmp.ge.s32.totalorder %s4107_s15, 2 }
   0x8   : > { %p152_p5 = scmp.lt.s32.totalorder (!%p127_p3), %s3537_s10, 1  ;;  %s2582_s16 = sshll.u32 (!%p127_p3), %s3533_s9, 3 }
   0x9   : > { %s4109_s15 = smov (%p26_p4, %s4107_s15), 0  ;;  %130 = sbr.rel (%p127_p3) target bundleno = 1396 (0x574), region = 28 }
   0xa   : > { %p160_p6 = scmp.lt.s32.totalorder (!%p127_p3), %s2582_s16, 31  ;;  %p2585_p7 = scmp.ne.s32.totalorder (!%p127_p3), %s3533_s9, 0 }
   0xe   : > { %s4111_s10 = smov (!%p152_p5, %s3537_s10), 1  ;;  %s4113_s16 = smov (!%p160_p6, %s2582_s16), 31 }
   0xf   : > { %s3213_s17 = smul.u32 384, %s4111_s10  ;;  %s2583_s18 = sshll.u32 %s4111_s10, 5 }
  0x10   : > { %s163_s19 = sadd.s32 %s2583_s18, %s4113_s16  ;;  %171 = sbr.rel (%p2585_p7) target bundleno = 410 (0x19a), region = 32 }
  0x11   : > { %s3603_s22 = scalar_lea.vmem %s4097_s0, %s3213_s17  ;;  %s2584_s23 = sshll.u32 %s163_s19, 3 }
  0x12   : > { %s3608_s26 = scalar_lea.vmem %s4099_s2, %s2584_s23 }
  0x15   : > { %v3255_v0 = vld [vmem:[%s4098_s1 + $0xb0] ss:$12 sps:$4 sm:$0xff]   ;;  %v3257_v1 = vld [vmem:[%s4098_s1 + $0xac] ss:$12 sps:$4 sm:$0xff]   ;;  %v3551_v2 = vmov 0  }
  0x16   : > { %1005 = vmatprep.mubr.bf16.mxu1 %v3551_v2  ;;  %780 = vmatprep.subr.bf16.mxu0 %v3255_v0  ;;  %v3258_v3 = vld [vmem:[%s4098_s1 + $0x98] ss:$12 sps:$4 sm:$0xff]   ;;  %v3260_v4 = vld [vmem:[%s4098_s1 + $0x94] ss:$12 sps:$4 sm:$0xff]   ;;  %v3263_v6 = vld [vmem:[%s4098_s1 + $0x7c] ss:$12 sps:$4 sm:$0xff]  }
  0x17   : > { %781 = vmatpush1.bf16.msra.mxu0 %v3257_v1  ;;  %v3261_v5 = vld [vmem:[%s4098_s1 + $0x80] ss:$12 sps:$4 sm:$0xff]   ;;  %v3264_v7 = vld [vmem:[%s4098_s1 + $0x68] ss:$12 sps:$4 sm:$0xff]   ;;  %v3276_v8 = vld [vmem:[%s4098_s1 + $0x230] ss:$12 sps:$4 sm:$0xff]  }
  0x18   : > { %782 = vmatprep.subr.bf16.mxu0 %v3258_v3  ;;  %v3278_v9 = vld [vmem:[%s4098_s1 + $0x22c] ss:$12 sps:$4 sm:$0xff]   ;;  %v3266_v10 = vld [vmem:[%s4098_s1 + $0x64] ss:$12 sps:$4 sm:$0xff]   ;;  %973 = vmatprep.subr.bf16.mxu1 %v3276_v8  ;;  %v3284_v13 = vld [vmem:[%s4098_s1 + $0x214] ss:$12 sps:$4 sm:$0xff]  }
  0x19   : > { %v3267_v11 = vld [vmem:[%s4098_s1 + $0x50] ss:$12 sps:$4 sm:$0xff]   ;;  %v3282_v12 = vld [vmem:[%s4098_s1 + $0x218] ss:$12 sps:$4 sm:$0xff]   ;;  %974 = vmatpush1.bf16.msra.mxu1 %v3278_v9  ;;  %v3288_v15 = vld [vmem:[%s4098_s1 + $0x200] ss:$12 sps:$4 sm:$0xff]  }
  0x1a   : > { %975 = vmatprep.subr.bf16.mxu1 %v3282_v12  ;;  %v3269_v14 = vld [vmem:[%s4098_s1 + $0x4c] ss:$12 sps:$4 sm:$0xff]   ;;  %v3290_v17 = vld [vmem:[%s4098_s1 + $0x1fc] ss:$12 sps:$4 sm:$0xff]   ;;  %v3272_v19 = vld [vmem:[%s4098_s1 + $0x34] ss:$12 sps:$4 sm:$0xff]  }
  0x1b   : > { %783 = vmatpush1.bf16.msra.mxu0 %v3260_v4  ;;  %v3270_v16 = vld [vmem:[%s4098_s1 + $0x38] ss:$12 sps:$4 sm:$0xff]   ;;  %v3294_v18 = vld [vmem:[%s4098_s1 + $0x1e8] ss:$12 sps:$4 sm:$0xff]   ;;  %v3273_v20 = vld [vmem:[%s4098_s1 + $0x20] ss:$12 sps:$4 sm:$0xff]  }
  0x1c   : > { %784 = vmatprep.subr.bf16.mxu0 %v3261_v5  ;;  %v3296_v21 = vld [vmem:[%s4098_s1 + $0x1e4] ss:$12 sps:$4 sm:$0xff]   ;;  %v3275_v23 = vld [vmem:[%s4098_s1 + $0x1c] ss:$12 sps:$4 sm:$0xff]   ;;  %v3302_v25 = vld [vmem:[%s4098_s1 + $0x1cc] ss:$12 sps:$4 sm:$0xff]  }
  0x1d   : > { %976 = vmatpush1.bf16.msra.mxu1 %v3284_v13  ;;  %v3300_v22 = vld [vmem:[%s4098_s1 + $0x1d0] ss:$12 sps:$4 sm:$0xff]   ;;  %v3279_v24 = vld [vmem:[%s4098_s1 + $0x8] ss:$12 sps:$4 sm:$0xff]   ;;  %v3306_v26 = vld [vmem:[%s4098_s1 + $0x1b8] ss:$12 sps:$4 sm:$0xff]  }
  0x1e   : > { %977 = vmatprep.subr.bf16.mxu1 %v3288_v15  ;;  %v3281_v27 = vld [vmem:[%s4098_s1 + $0x4] ss:$12 sps:$4 sm:$0xff]   ;;  %v3308_v29 = vld [vmem:[%s4098_s1 + $0x1b4] ss:$12 sps:$4 sm:$0xff]   ;;  %v3287_v31 = vld [vmem:[%s4098_s1 + $0x16c] ss:$12 sps:$4 sm:$0xff]  }
  0x1f   : > { %785 = vmatpush1.bf16.msra.mxu0 %v3263_v6  ;;  %v3285_v28 = vld [vmem:[%s4098_s1 + $0x170] ss:$12 sps:$4 sm:$0xff]   ;;  %v3312_v30 = vld [vmem:[%s4098_s1 + $0x1a0] ss:$12 sps:$4 sm:$0xff]   ;;  %v3291_v32 = vld [vmem:[%s4098_s1 + $0x158] ss:$12 sps:$4 sm:$0xff]  }
  0x20   : > { %786 = vmatprep.subr.bf16.mxu0 %v3264_v7  ;;  %v3314_v33 = vld [vmem:[%s4098_s1 + $0x19c] ss:$12 sps:$4 sm:$0xff]   ;;  %v3330_v35 = vld [vmem:[%s3603_s22 + $0x4] ss:$12 sps:$4 sm:$0xff]   ;;  %v3293_v36 = vld [vmem:[%s4098_s1 + $0x154] ss:$12 sps:$4 sm:$0xff]  }
  0x21   : > { %978 = vmatpush1.bf16.msra.mxu1 %v3290_v17  ;;  %v3318_v34 = vld [vmem:[%s4098_s1 + $0x188] ss:$12 sps:$4 sm:$0xff]   ;;  %v3297_v37 = vld [vmem:[%s4098_s1 + $0x140] ss:$12 sps:$4 sm:$0xff]   ;;  %812 = vmatprep.mubr.bf16.mxu0 %v3330_v35  ;;  %v3320_v38 = vld [vmem:[%s4098_s1 + $0x184] ss:$12 sps:$4 sm:$0xff]  }
  0x22   : > { %979 = vmatprep.subr.bf16.mxu1 %v3294_v18  ;;  %v3299_v39 = vld [vmem:[%s4098_s1 + $0x13c] ss:$12 sps:$4 sm:$0xff]   ;;  %v3305_v42 = vld [vmem:[%s4098_s1 + $0x124] ss:$12 sps:$4 sm:$0xff]   ;;  %v3311_v44 = vld [vmem:[%s4098_s1 + $0x10c] ss:$12 sps:$4 sm:$0xff]  }
  0x23   : > { %787 = vmatpush1.bf16.msra.mxu0 %v3266_v10  ;;  %v3303_v40 = vld [vmem:[%s4098_s1 + $0x128] ss:$12 sps:$4 sm:$0xff]   ;;  %v3309_v43 = vld [vmem:[%s4098_s1 + $0x110] ss:$12 sps:$4 sm:$0xff]   ;;  %v3315_v45 = vld [vmem:[%s4098_s1 + $0xf8] ss:$12 sps:$4 sm:$0xff]  }
  0x24   : > { %788 = vmatprep.subr.bf16.mxu0 %v3267_v11  ;;  %v3324_v41 = vld [vmem:[%s3603_s22 + $0x8] ss:$12 sps:$4 sm:$0xff]   ;;  %v3331_v46 = vld [vmem:[%s3603_s22 + $0x20] ss:$12 sps:$4 sm:$0xff]   ;;  %v3335_v51 = vld [vmem:[%s3603_s22 + $0x38] ss:$12 sps:$4 sm:$0xff]  }
  0x25   : > { %980 = vmatpush1.bf16.msra.mxu1 %v3296_v21  ;;  %v3317_v47 = vld [vmem:[%s4098_s1 + $0xf4] ss:$12 sps:$4 sm:$0xff]   ;;  %v3323_v49 = vld [vmem:[%s4098_s1 + $0xdc] ss:$12 sps:$4 sm:$0xff]   ;;  %v3327_v52 = vld [vmem:[%s4098_s1 + $0xc4] ss:$12 sps:$4 sm:$0xff]  }
  0x26   : > { %981 = vmatprep.subr.bf16.mxu1 %v3300_v22  ;;  %v3321_v48 = vld [vmem:[%s4098_s1 + $0xe0] ss:$12 sps:$4 sm:$0xff]   ;;  %v3325_v50 = vld [vmem:[%s4098_s1 + $0xc8] ss:$12 sps:$4 sm:$0xff]   ;;  %v3339_v55 = vld [vmem:[%s3603_s22 + $0x50] ss:$12 sps:$4 sm:$0xff]  }
  0x27   : > { %789 = vmatpush1.bf16.msra.mxu0 %v3269_v14  ;;  %v3328_v53 = vld [vmem:[%s3603_s22] ss:$12 sps:$4 sm:$0xff]   ;;  %v3332_v54 = vld [vmem:[%s3603_s22 + $0x1c] ss:$12 sps:$4 sm:$0xff]   ;;  %v3334_v56 = vld [vmem:[%s3603_s22 + $0x18] ss:$12 sps:$4 sm:$0xff]  }
  0x28   : > { %790 = vmatprep.subr.bf16.mxu0 %v3270_v16  ;;  %v3336_v57 = vld [vmem:[%s3603_s22 + $0x34] ss:$12 sps:$4 sm:$0xff]   ;;  %v3338_v59 = vld [vmem:[%s3603_s22 + $0x30] ss:$12 sps:$4 sm:$0xff]   ;;  %v3340_v60 = vld [vmem:[%s3603_s22 + $0x4c] ss:$12 sps:$4 sm:$0xff]  }
  0x29   : > { %982 = vmatpush1.bf16.msra.mxu1 %v3302_v25  ;;  %v3343_v58 = vld [vmem:[%s3603_s22 + $0x68] ss:$12 sps:$4 sm:$0xff]   ;;  %v3347_v61 = vld [vmem:[%s3603_s22 + $0x80] ss:$12 sps:$4 sm:$0xff]   ;;  %v3344_v63 = vld [vmem:[%s3603_s22 + $0x64] ss:$12 sps:$4 sm:$0xff]  }
  0x2a   : > { %983 = vmatprep.subr.bf16.mxu1 %v3306_v26  ;;  %v3342_v62 = vld [vmem:[%s3603_s22 + $0x48] ss:$12 sps:$4 sm:$0xff]   ;;  %v3351_v0 = vld [vmem:[%s3603_s22 + $0x98] ss:$12 sps:$4 sm:$0xff]   ;;  %v3346_v1 = vld [vmem:[%s3603_s22 + $0x60] ss:$12 sps:$4 sm:$0xff]  }
  0x2b   : > { %791 = vmatpush1.bf16.msra.mxu0 %v3272_v19  ;;  %v3348_v3 = vld [vmem:[%s3603_s22 + $0x7c] ss:$12 sps:$4 sm:$0xff]   ;;  %v3350_v5 = vld [vmem:[%s3603_s22 + $0x78] ss:$12 sps:$4 sm:$0xff]   ;;  %v3352_v6 = vld [vmem:[%s3603_s22 + $0x94] ss:$12 sps:$4 sm:$0xff]  }
  0x2c   : > { %792 = vmatprep.subr.bf16.mxu0 %v3273_v20  ;;  %v3355_v4 = vld [vmem:[%s3603_s22 + $0xb0] ss:$12 sps:$4 sm:$0xff]   ;;  %v3359_v7 = vld [vmem:[%s3603_s22 + $0xc8] ss:$12 sps:$4 sm:$0xff]   ;;  %v3356_v9 = vld [vmem:[%s3603_s22 + $0xac] ss:$12 sps:$4 sm:$0xff]  }
  0x2d   : > { %984 = vmatpush1.bf16.msra.mxu1 %v3308_v29  ;;  %v3354_v8 = vld [vmem:[%s3603_s22 + $0x90] ss:$12 sps:$4 sm:$0xff]   ;;  %v3363_v10 = vld [vmem:[%s3603_s22 + $0xe0] ss:$12 sps:$4 sm:$0xff]   ;;  %v3358_v11 = vld [vmem:[%s3603_s22 + $0xa8] ss:$12 sps:$4 sm:$0xff]  }
  0x2e   : > { %985 = vmatprep.subr.bf16.mxu1 %v3312_v30  ;;  %v3360_v12 = vld [vmem:[%s3603_s22 + $0xc4] ss:$12 sps:$4 sm:$0xff]   ;;  %v3362_v14 = vld [vmem:[%s3603_s22 + $0xc0] ss:$12 sps:$4 sm:$0xff]   ;;  %v3364_v15 = vld [vmem:[%s3603_s22 + $0xdc] ss:$12 sps:$4 sm:$0xff]  }
  0x2f   : > { %793 = vmatpush1.bf16.msra.mxu0 %v3275_v23  ;;  %v3367_v13 = vld [vmem:[%s3603_s22 + $0xf8] ss:$12 sps:$4 sm:$0xff]   ;;  %v3371_v16 = vld [vmem:[%s3603_s22 + $0x110] ss:$12 sps:$4 sm:$0xff]   ;;  %v3368_v18 = vld [vmem:[%s3603_s22 + $0xf4] ss:$12 sps:$4 sm:$0xff]  }
  0x30   : > { %794 = vmatprep.subr.bf16.mxu0 %v3279_v24  ;;  %v3366_v17 = vld [vmem:[%s3603_s22 + $0xd8] ss:$12 sps:$4 sm:$0xff]   ;;  %v3375_v19 = vld [vmem:[%s3603_s22 + $0x128] ss:$12 sps:$4 sm:$0xff]   ;;  %v3370_v20 = vld [vmem:[%s3603_s22 + $0xf0] ss:$12 sps:$4 sm:$0xff]  }
  0x31   : > { %986 = vmatpush1.bf16.msra.mxu1 %v3314_v33  ;;  %v3372_v21 = vld [vmem:[%s3603_s22 + $0x10c] ss:$12 sps:$4 sm:$0xff]   ;;  %v3374_v23 = vld [vmem:[%s3603_s22 + $0x108] ss:$12 sps:$4 sm:$0xff]   ;;  %v3376_v24 = vld [vmem:[%s3603_s22 + $0x124] ss:$12 sps:$4 sm:$0xff]  }
  0x32   : > { %987 = vmatprep.subr.bf16.mxu1 %v3318_v34  ;;  %v3379_v22 = vld [vmem:[%s3603_s22 + $0x140] ss:$12 sps:$4 sm:$0xff]   ;;  %v3383_v25 = vld [vmem:[%s3603_s22 + $0x158] ss:$12 sps:$4 sm:$0xff]   ;;  %v3390_v33 = vld [vmem:[%s3603_s22 + $0x168] ss:$12 sps:$4 sm:$0xff]  }
  0x33   : > { %795 = vmatpush1.bf16.msra.mxu0 %v3281_v27  ;;  %v3378_v26 = vld [vmem:[%s3603_s22 + $0x120] ss:$12 sps:$4 sm:$0xff]   ;;  %v3380_v27 = vld [vmem:[%s3603_s22 + $0x13c] ss:$12 sps:$4 sm:$0xff]   ;;  %v3382_v29 = vld [vmem:[%s3603_s22 + $0x138] ss:$12 sps:$4 sm:$0xff]  }
  0x34   : > { %796 = vmatprep.subr.bf16.mxu0 %v3285_v28  ;;  %v3387_v28 = vld [vmem:[%s3603_s22 + $0x170] ss:$12 sps:$4 sm:$0xff]   ;;  %v3384_v30 = vld [vmem:[%s3603_s22 + $0x154] ss:$12 sps:$4 sm:$0xff]  }
  0x35   : > { %988 = vmatpush1.bf16.msra.mxu1 %v3320_v38 }
  0x37   : > { %797 = vmatpush2.bf16.msra.mxu0 %v3287_v31  ;;  %v3386_v31 = vld [vmem:[%s3603_s22 + $0x150] ss:$12 sps:$4 sm:$0xff]  }
  0x38   : > { %798 = vmatprep.subr.bf16.mxu0 %v3291_v32  ;;  %1006 = vmatmul.mubr.bf16.vlgmr.msra.gmra.mxu1 %v3324_v41  ;;  %v3388_v32 = vld [vmem:[%s3603_s22 + $0x16c] ss:$12 sps:$4 sm:$0xff]  }
  0x39   : > { %1015 = vmatprep.mubr.bf16.mxu1 %v3551_v2 }
  0x3b   : > { %799 = vmatpush2.bf16.msra.mxu0 %v3293_v36 }
  0x3c   : > { %800 = vmatprep.subr.bf16.mxu0 %v3297_v37 }
  0x3f   : > { %801 = vmatpush2.bf16.msra.mxu0 %v3299_v39 }
  0x40   : > { %802 = vmatprep.subr.bf16.mxu0 %v3303_v40  ;;  %1016 = vmatmul.mubr.bf16.gmra.mxu1 %v3331_v46 }
  0x41   : > { %1025 = vmatprep.mubr.bf16.mxu1 %v3551_v2 }
  0x43   : > { %803 = vmatpush2.bf16.msra.mxu0 %v3305_v42 }
  0x44   : > { %804 = vmatprep.subr.bf16.mxu0 %v3309_v43 }
  0x47   : > { %805 = vmatpush2.bf16.msra.mxu0 %v3311_v44 }
  0x48   : > { %806 = vmatprep.subr.bf16.mxu0 %v3315_v45  ;;  %1026 = vmatmul.mubr.bf16.gmra.mxu1 %v3335_v51 }
  0x49   : > { %1035 = vmatprep.mubr.bf16.mxu1 %v3551_v2 }
  0x4b   : > { %807 = vmatpush2.bf16.msra.mxu0 %v3317_v47 }
  0x4c   : > { %808 = vmatprep.subr.bf16.mxu0 %v3321_v48 }
  0x4f   : > { %809 = vmatpush2.bf16.msra.mxu0 %v3323_v49 }
  0x50   : > { %810 = vmatprep.subr.bf16.mxu0 %v3325_v50  ;;  %1036 = vmatmul.mubr.bf16.gmra.mxu1 %v3339_v55 }
  0x51   : > { %1045 = vmatprep.mubr.bf16.mxu1 %v3551_v2 }
  0x53   : > { %811 = vmatpush2.bf16.msra.mxu0 %v3327_v52 }
  0x56   : > { %813 = vmatmul.mubr.bf16.vlgmr.msra.gmra.mxu0 %v3328_v53 }
  0x57   : > { %822 = vmatprep.mubr.bf16.mxu0 %v3332_v54 }
  0x58   : > { %1046 = vmatmul.mubr.bf16.gmra.mxu1 %v3343_v58 }
  0x59   : > { %1055 = vmatprep.mubr.bf16.mxu1 %v3551_v2 }
  0x5e   : > { %823 = vmatmul.mubr.bf16.gmra.mxu0 %v3334_v56 }
  0x5f   : > { %832 = vmatprep.mubr.bf16.mxu0 %v3336_v57 }
  0x60   : > { %1056 = vmatmul.mubr.bf16.gmra.mxu1 %v3347_v61 }
  0x61   : > { %1065 = vmatprep.mubr.bf16.mxu1 %v3551_v2 }
  0x66   : > { %833 = vmatmul.mubr.bf16.gmra.mxu0 %v3338_v59 }
  0x67   : > { %842 = vmatprep.mubr.bf16.mxu0 %v3340_v60 }
  0x68   : > { %1066 = vmatmul.mubr.bf16.gmra.mxu1 %v3351_v0 }
  0x69   : > { %1075 = vmatprep.mubr.bf16.mxu1 %v3551_v2 }
  0x6e   : > { %843 = vmatmul.mubr.bf16.gmra.mxu0 %v3342_v62 }
  0x6f   : > { %852 = vmatprep.mubr.bf16.mxu0 %v3344_v63 }
  0x70   : > { %1076 = vmatmul.mubr.bf16.gmra.mxu1 %v3355_v4 }
  0x71   : > { %1085 = vmatprep.mubr.bf16.mxu1 %v3551_v2 }
  0x76   : > { %853 = vmatmul.mubr.bf16.gmra.mxu0 %v3346_v1 }
  0x77   : > { %862 = vmatprep.mubr.bf16.mxu0 %v3348_v3 }
  0x78   : > { %1086 = vmatmul.mubr.bf16.gmra.mxu1 %v3359_v7 }
  0x79   : > { %1095 = vmatprep.mubr.bf16.mxu1 %v3551_v2 }
  0x7e   : > { %863 = vmatmul.mubr.bf16.gmra.mxu0 %v3350_v5 }
  0x7f   : > { %872 = vmatprep.mubr.bf16.mxu0 %v3352_v6 }
  0x80   : > { %1096 = vmatmul.mubr.bf16.gmra.mxu1 %v3363_v10 }
  0x81   : > { %1105 = vmatprep.mubr.bf16.mxu1 %v3551_v2 }
  0x86   : > { %873 = vmatmul.mubr.bf16.gmra.mxu0 %v3354_v8 }
  0x87   : > { %882 = vmatprep.mubr.bf16.mxu0 %v3356_v9 }
  0x88   : > { %1106 = vmatmul.mubr.bf16.gmra.mxu1 %v3367_v13 }
  0x89   : > { %1115 = vmatprep.mubr.bf16.mxu1 %v3551_v2 }
  0x8e   : > { %883 = vmatmul.mubr.bf16.gmra.mxu0 %v3358_v11 }
  0x8f   : > { %892 = vmatprep.mubr.bf16.mxu0 %v3360_v12 }
  0x90   : > { %1116 = vmatmul.mubr.bf16.gmra.mxu1 %v3371_v16 }
  0x91   : > { %1125 = vmatprep.mubr.bf16.mxu1 %v3551_v2 }
  0x96   : > { %893 = vmatmul.mubr.bf16.gmra.mxu0 %v3362_v14 }
  0x97   : > { %902 = vmatprep.mubr.bf16.mxu0 %v3364_v15 }
  0x98   : > { %1126 = vmatmul.mubr.bf16.gmra.mxu1 %v3375_v19 }
  0x99   : > { %1135 = vmatprep.mubr.bf16.mxu1 %v3551_v2 }
  0x9e   : > { %903 = vmatmul.mubr.bf16.gmra.mxu0 %v3366_v17 }
  0x9f   : > { %912 = vmatprep.mubr.bf16.mxu0 %v3368_v18 }
  0xa0   : > { %1136 = vmatmul.mubr.bf16.gmra.mxu1 %v3379_v22 }
  0xa1   : > { %1145 = vmatprep.mubr.bf16.mxu1 %v3551_v2 }
  0xa6   : > { %913 = vmatmul.mubr.bf16.gmra.mxu0 %v3370_v20 }
  0xa7   : > { %922 = vmatprep.mubr.bf16.mxu0 %v3372_v21 }
  0xa8   : > { %1146 = vmatmul.mubr.bf16.gmra.mxu1 %v3383_v25 }
  0xa9   : > { %1155 = vmatprep.mubr.bf16.mxu1 %v3551_v2 }
  0xae   : > { %923 = vmatmul.mubr.bf16.gmra.mxu0 %v3374_v23 }
  0xaf   : > { %932 = vmatprep.mubr.bf16.mxu0 %v3376_v24 }
  0xb0   : > { %1156 = vmatmul.mubr.bf16.gmra.mxu1 %v3387_v28 }
  0xb6   : > { %933 = vmatmul.mubr.bf16.gmra.mxu0 %v3378_v26 }
  0xb7   : > { %942 = vmatprep.mubr.bf16.mxu0 %v3380_v27 }
  0xbe   : > { %943 = vmatmul.mubr.bf16.gmra.mxu0 %v3382_v29 }
  0xbf   : > { %952 = vmatprep.mubr.bf16.mxu0 %v3384_v30 }
  0xc6   : > { %953 = vmatmul.mubr.bf16.gmra.mxu0 %v3386_v31 }
  0xc7   : > { %962 = vmatprep.mubr.bf16.mxu0 %v3388_v32 }
  0xce   : > { %963 = vmatmul.mubr.bf16.gmra.mxu0 %v3390_v33 }
  0xf8   : > { %v1007_v34 = vpop.f32.mrf.mxu1 }
  0xfa   : > { %v1009_v35 = vpop.f32.mrf.mxu1 }
  0xfc   : > { %v1011_v36 = vpop.f32.mrf.mxu1 }
  0xfe   : > { %v1013_v2 = vpop.f32.mrf.mxu1 }
 0x100   : > { %v1017_v37 = vpop.f32.mrf.mxu1 }
 0x102   : > { %v1019_v38 = vpop.f32.mrf.mxu1 }
 0x104   : > { %v1021_v39 = vpop.f32.mrf.mxu1 }
 0x106   : > { %v1023_v40 = vpop.f32.mrf.mxu1 }
 0x108   : > { %v1027_v41 = vpop.f32.mrf.mxu1 }
 0x10a   : > { %v1029_v42 = vpop.f32.mrf.mxu1 }
 0x10c   : > { %v1031_v43 = vpop.f32.mrf.mxu1 }
 0x10e   : > { %v1033_v45 = vpop.f32.mrf.mxu1 }
 0x110   : > { %v1037_v47 = vpop.f32.mrf.mxu1 }
 0x112   : > { %v1039_v49 = vpop.f32.mrf.mxu1 }
 0x114   : > { %v1041_v53 = vpop.f32.mrf.mxu1 }
 0x116   : > { %v814_v44 = vpop.f32.mrf.mxu0  ;;  %v1043_v58 = vpop.f32.mrf.mxu1 }
 0x117   : > { %v1008_v50 = vadd.f32 %v1007_v34, %v814_v44 }
 0x118   : > { %v816_v46 = vpop.f32.mrf.mxu0  ;;  %v1047_v61 = vpop.f32.mrf.mxu1 }
 0x119   : > { %v1010_v54 = vadd.f32 %v1009_v35, %v816_v46 }
 0x11a   : > { %v818_v48 = vpop.f32.mrf.mxu0  ;;  %v1049_v63 = vpop.f32.mrf.mxu1 }
 0x11b   : > { %v1012_v51 = vadd.f32 %v1011_v36, %v818_v48 }
 0x11c   : > { %v820_v52 = vpop.f32.mrf.mxu0  ;;  %v1051_v4 = vpop.f32.mrf.mxu1 }
 0x11d   : > { %v2886_v55 = vpack.c.bf16 %v1012_v51, %v1008_v50  ;;  %v1014_v56 = vadd.f32 %v1013_v2, %v820_v52 }
 0x11e   : > { %v824_v57 = vpop.f32.mrf.mxu0  ;;  %v1053_v9 = vpop.f32.mrf.mxu1 }
 0x11f   : > { %2887 = vst [vmem:[#allocation2] sm:$0xff] %v2886_v55   ;;  %v2966_v59 = vpack.c.bf16 %v1014_v56, %v1010_v54  ;;  %v1018_v0 = vadd.f32 %v1017_v37, %v824_v57 }
 0x120   : > { %v826_v60 = vpop.f32.mrf.mxu0  ;;  %v1057_v12 = vpop.f32.mrf.mxu1 }
 0x121   : > { %2967 = vst [vmem:[#allocation3] sm:$0xff] %v2966_v59   ;;  %v1020_v5 = vadd.f32 %v1019_v38, %v826_v60 }
 0x122   : > { %v828_v62 = vpop.f32.mrf.mxu0  ;;  %v1059_v14 = vpop.f32.mrf.mxu1 }
 0x123   : > { %v1022_v1 = vadd.f32 %v1021_v39, %v828_v62 }
 0x124   : > { %v830_v3 = vpop.f32.mrf.mxu0  ;;  %v1061_v18 = vpop.f32.mrf.mxu1 }
 0x125   : > { %v2891_v6 = vpack.c.bf16 %v1022_v1, %v1018_v0  ;;  %v1024_v7 = vadd.f32 %v1023_v40, %v830_v3 }
 0x126   : > { %v834_v8 = vpop.f32.mrf.mxu0  ;;  %v1063_v23 = vpop.f32.mrf.mxu1 }
 0x127   : > { %3043 = vst [vmem:[#allocation2 + $0x8] sm:$0xff] %v2891_v6   ;;  %v2971_v10 = vpack.c.bf16 %v1024_v7, %v1020_v5  ;;  %v1028_v15 = vadd.f32 %v1027_v41, %v834_v8 }
 0x128   : > { %v836_v11 = vpop.f32.mrf.mxu0  ;;  %v1067_v26 = vpop.f32.mrf.mxu1 }
 0x129   : > { %3058 = vst [vmem:[#allocation3 + $0x8] sm:$0xff] %v2971_v10   ;;  %v1030_v19 = vadd.f32 %v1029_v42, %v836_v11 }
 0x12a   : > { %v838_v13 = vpop.f32.mrf.mxu0  ;;  %v1069_v28 = vpop.f32.mrf.mxu1 }
 0x12b   : > { %v1032_v16 = vadd.f32 %v1031_v43, %v838_v13 }
 0x12c   : > { %v840_v17 = vpop.f32.mrf.mxu0  ;;  %v1071_v32 = vpop.f32.mrf.mxu1 }
 0x12d   : > { %v2896_v20 = vpack.c.bf16 %v1032_v16, %v1028_v15  ;;  %v1034_v21 = vadd.f32 %v1033_v45, %v840_v17 }
 0x12e   : > { %v844_v22 = vpop.f32.mrf.mxu0  ;;  %v1073_v2 = vpop.f32.mrf.mxu1 }
 0x12f   : > { %3044 = vst [vmem:[#allocation2 + $0x10] sm:$0xff] %v2896_v20   ;;  %v2976_v24 = vpack.c.bf16 %v1034_v21, %v1030_v19  ;;  %v1038_v29 = vadd.f32 %v1037_v47, %v844_v22 }
 0x130   : > { %v846_v25 = vpop.f32.mrf.mxu0  ;;  %v1077_v39 = vpop.f32.mrf.mxu1 }
 0x131   : > { %3059 = vst [vmem:[#allocation3 + $0x10] sm:$0xff] %v2976_v24   ;;  %v1040_v33 = vadd.f32 %v1039_v49, %v846_v25 }
 0x132   : > { %v848_v27 = vpop.f32.mrf.mxu0  ;;  %v1079_v41 = vpop.f32.mrf.mxu1 }
 0x133   : > { %v1042_v30 = vadd.f32 %v1041_v53, %v848_v27 }
 0x134   : > { %v850_v31 = vpop.f32.mrf.mxu0  ;;  %v1081_v45 = vpop.f32.mrf.mxu1 }
 0x135   : > { %v2901_v34 = vpack.c.bf16 %v1042_v30, %v1038_v29  ;;  %v1044_v35 = vadd.f32 %v1043_v58, %v850_v31 }
 0x136   : > { %v854_v36 = vpop.f32.mrf.mxu0  ;;  %v1083_v49 = vpop.f32.mrf.mxu1 }
 0x137   : > { %3045 = vst [vmem:[#allocation2 + $0x18] sm:$0xff] %v2901_v34   ;;  %v2981_v37 = vpack.c.bf16 %v1044_v35, %v1040_v33  ;;  %v1048_v42 = vadd.f32 %v1047_v61, %v854_v36 }
 0x138   : > { %v856_v38 = vpop.f32.mrf.mxu0  ;;  %v1087_v53 = vpop.f32.mrf.mxu1 }
 0x139   : > { %3060 = vst [vmem:[#allocation3 + $0x18] sm:$0xff] %v2981_v37   ;;  %v1050_v46 = vadd.f32 %v1049_v63, %v856_v38 }
 0x13a   : > { %v858_v40 = vpop.f32.mrf.mxu0  ;;  %v1089_v55 = vpop.f32.mrf.mxu1 }
 0x13b   : > { %v1052_v43 = vadd.f32 %v1051_v4, %v858_v40 }
 0x13c   : > { %v860_v44 = vpop.f32.mrf.mxu0  ;;  %v1091_v59 = vpop.f32.mrf.mxu1 }
 0x13d   : > { %v2906_v47 = vpack.c.bf16 %v1052_v43, %v1048_v42  ;;  %v1054_v48 = vadd.f32 %v1053_v9, %v860_v44 }
 0x13e   : > { %v864_v50 = vpop.f32.mrf.mxu0  ;;  %v1093_v63 = vpop.f32.mrf.mxu1 }
 0x13f   : > { %3046 = vst [vmem:[#allocation2 + $0x20] sm:$0xff] %v2906_v47   ;;  %v2986_v51 = vpack.c.bf16 %v1054_v48, %v1050_v46  ;;  %v1058_v56 = vadd.f32 %v1057_v12, %v864_v50 }
 0x140   : > { %v866_v52 = vpop.f32.mrf.mxu0  ;;  %v1097_v4 = vpop.f32.mrf.mxu1 }
 0x141   : > { %3061 = vst [vmem:[#allocation3 + $0x20] sm:$0xff] %v2986_v51   ;;  %v1060_v60 = vadd.f32 %v1059_v14, %v866_v52 }
 0x142   : > { %v868_v54 = vpop.f32.mrf.mxu0  ;;  %v1099_v6 = vpop.f32.mrf.mxu1 }
 0x143   : > { %v1062_v57 = vadd.f32 %v1061_v18, %v868_v54 }
 0x144   : > { %v870_v58 = vpop.f32.mrf.mxu0  ;;  %v1101_v10 = vpop.f32.mrf.mxu1 }
 0x145   : > { %v2911_v61 = vpack.c.bf16 %v1062_v57, %v1058_v56  ;;  %v1064_v62 = vadd.f32 %v1063_v23, %v870_v58 }
 0x146   : > { %v874_v0 = vpop.f32.mrf.mxu0  ;;  %v1103_v14 = vpop.f32.mrf.mxu1 }
 0x147   : > { %3047 = vst [vmem:[#allocation2 + $0x28] sm:$0xff] %v2911_v61   ;;  %v2991_v1 = vpack.c.bf16 %v1064_v62, %v1060_v60  ;;  %v1068_v7 = vadd.f32 %v1067_v26, %v874_v0 }
 0x148   : > { %v876_v3 = vpop.f32.mrf.mxu0  ;;  %v1107_v18 = vpop.f32.mrf.mxu1 }
 0x149   : > { %3062 = vst [vmem:[#allocation3 + $0x28] sm:$0xff] %v2991_v1   ;;  %v1070_v11 = vadd.f32 %v1069_v28, %v876_v3 }
 0x14a   : > { %v878_v5 = vpop.f32.mrf.mxu0  ;;  %v1109_v20 = vpop.f32.mrf.mxu1 }
 0x14b   : > { %v1072_v8 = vadd.f32 %v1071_v32, %v878_v5 }
 0x14c   : > { %v880_v9 = vpop.f32.mrf.mxu0  ;;  %v1111_v24 = vpop.f32.mrf.mxu1 }
 0x14d   : > { %v2916_v12 = vpack.c.bf16 %v1072_v8, %v1068_v7  ;;  %v1074_v13 = vadd.f32 %v1073_v2, %v880_v9 }
 0x14e   : > { %v884_v15 = vpop.f32.mrf.mxu0  ;;  %v1113_v28 = vpop.f32.mrf.mxu1 }
 0x14f   : > { %3048 = vst [vmem:[#allocation2 + $0x30] sm:$0xff] %v2916_v12   ;;  %v2996_v16 = vpack.c.bf16 %v1074_v13, %v1070_v11  ;;  %v1078_v21 = vadd.f32 %v1077_v39, %v884_v15 }
 0x150   : > { %v886_v17 = vpop.f32.mrf.mxu0  ;;  %v1117_v32 = vpop.f32.mrf.mxu1 }
 0x151   : > { %3063 = vst [vmem:[#allocation3 + $0x30] sm:$0xff] %v2996_v16   ;;  %v1080_v25 = vadd.f32 %v1079_v41, %v886_v17 }
 0x152   : > { %v888_v19 = vpop.f32.mrf.mxu0  ;;  %v1119_v34 = vpop.f32.mrf.mxu1 }
 0x153   : > { %v1082_v22 = vadd.f32 %v1081_v45, %v888_v19 }
 0x154   : > { %v890_v23 = vpop.f32.mrf.mxu0  ;;  %v1121_v37 = vpop.f32.mrf.mxu1 }
 0x155   : > { %v2921_v26 = vpack.c.bf16 %v1082_v22, %v1078_v21  ;;  %v1084_v27 = vadd.f32 %v1083_v49, %v890_v23 }
 0x156   : > { %v894_v29 = vpop.f32.mrf.mxu0  ;;  %v1123_v41 = vpop.f32.mrf.mxu1 }
 0x157   : > { %3049 = vst [vmem:[#allocation2 + $0x38] sm:$0xff] %v2921_v26   ;;  %v3001_v30 = vpack.c.bf16 %v1084_v27, %v1080_v25  ;;  %v1088_v35 = vadd.f32 %v1087_v53, %v894_v29 }
 0x158   : > { %v896_v31 = vpop.f32.mrf.mxu0  ;;  %v1127_v45 = vpop.f32.mrf.mxu1 }
 0x159   : > { %3064 = vst [vmem:[#allocation3 + $0x38] sm:$0xff] %v3001_v30   ;;  %v1090_v38 = vadd.f32 %v1089_v55, %v896_v31 }
 0x15a   : > { %v898_v33 = vpop.f32.mrf.mxu0  ;;  %v1129_v47 = vpop.f32.mrf.mxu1 }
 0x15b   : > { %v1092_v36 = vadd.f32 %v1091_v59, %v898_v33 }
 0x15c   : > { %v900_v2 = vpop.f32.mrf.mxu0  ;;  %v1131_v51 = vpop.f32.mrf.mxu1 }
 0x15d   : > { %v2926_v39 = vpack.c.bf16 %v1092_v36, %v1088_v35  ;;  %v1094_v40 = vadd.f32 %v1093_v63, %v900_v2 }
 0x15e   : > { %v904_v42 = vpop.f32.mrf.mxu0  ;;  %v1133_v55 = vpop.f32.mrf.mxu1 }
 0x15f   : > { %3050 = vst [vmem:[#allocation2 + $0x40] sm:$0xff] %v2926_v39   ;;  %v3006_v43 = vpack.c.bf16 %v1094_v40, %v1090_v38  ;;  %v1098_v48 = vadd.f32 %v1097_v4, %v904_v42 }
 0x160   : > { %v906_v44 = vpop.f32.mrf.mxu0  ;;  %v1137_v59 = vpop.f32.mrf.mxu1 }
 0x161   : > { %3065 = vst [vmem:[#allocation3 + $0x40] sm:$0xff] %v3006_v43   ;;  %v1100_v52 = vadd.f32 %v1099_v6, %v906_v44 }
 0x162   : > { %v908_v46 = vpop.f32.mrf.mxu0  ;;  %v1139_v63 = vpop.f32.mrf.mxu1 }
 0x163   : > { %v1102_v50 = vadd.f32 %v1101_v10, %v908_v46 }
 0x164   : > { %v910_v49 = vpop.f32.mrf.mxu0  ;;  %v1141_v8 = vpop.f32.mrf.mxu1 }
 0x165   : > { %v2931_v53 = vpack.c.bf16 %v1102_v50, %v1098_v48  ;;  %v1104_v54 = vadd.f32 %v1103_v14, %v910_v49 }
 0x166   : > { %v914_v56 = vpop.f32.mrf.mxu0  ;;  %v1143_v13 = vpop.f32.mrf.mxu1 }
 0x167   : > { %3051 = vst [vmem:[#allocation2 + $0x48] sm:$0xff] %v2931_v53   ;;  %v3011_v57 = vpack.c.bf16 %v1104_v54, %v1100_v52  ;;  %v1108_v61 = vadd.f32 %v1107_v18, %v914_v56 }
 0x168   : > { %v916_v58 = vpop.f32.mrf.mxu0 }
 0x169   : > { %3066 = vst [vmem:[#allocation3 + $0x48] sm:$0xff] %v3011_v57   ;;  %v1110_v1 = vadd.f32 %v1109_v20, %v916_v58  ;;  %v1147_v20 = vpop.f32.mrf.mxu1 }
 0x16a   : > { %v918_v60 = vpop.f32.mrf.mxu0 }
 0x16b   : > { %v1112_v62 = vadd.f32 %v1111_v24, %v918_v60  ;;  %v1149_v25 = vpop.f32.mrf.mxu1 }
 0x16c   : > { %v920_v0 = vpop.f32.mrf.mxu0 }
 0x16d   : > { %v2936_v3 = vpack.c.bf16 %v1112_v62, %v1108_v61  ;;  %v1114_v4 = vadd.f32 %v1113_v28, %v920_v0 }
 0x16e   : > { %v924_v5 = vpop.f32.mrf.mxu0 }
 0x16f   : > { %3052 = vst [vmem:[#allocation2 + $0x50] sm:$0xff] %v2936_v3   ;;  %v3016_v6 = vpack.c.bf16 %v1114_v4, %v1110_v1  ;;  %v1118_v10 = vadd.f32 %v1117_v32, %v924_v5  ;;  %v1151_v32 = vpop.f32.mrf.mxu1 }
 0x170   : > { %v926_v7 = vpop.f32.mrf.mxu0 }
 0x171   : > { %3067 = vst [vmem:[#allocation3 + $0x50] sm:$0xff] %v3016_v6   ;;  %v1120_v15 = vadd.f32 %v1119_v34, %v926_v7  ;;  %v1153_v2 = vpop.f32.mrf.mxu1 }
 0x172   : > { %v928_v9 = vpop.f32.mrf.mxu0 }
 0x173   : > { %v1122_v11 = vadd.f32 %v1121_v37, %v928_v9  ;;  %v1157_v43 = vpop.f32.mrf.mxu1 }
 0x174   : > { %v930_v12 = vpop.f32.mrf.mxu0 }
 0x175   : > { %v2941_v14 = vpack.c.bf16 %v1122_v11, %v1118_v10  ;;  %v1124_v16 = vadd.f32 %v1123_v41, %v930_v12 }
 0x176   : > { %v934_v17 = vpop.f32.mrf.mxu0 }
 0x177   : > { %3053 = vst [vmem:[#allocation2 + $0x58] sm:$0xff] %v2941_v14   ;;  %v3021_v18 = vpack.c.bf16 %v1124_v16, %v1120_v15  ;;  %v1128_v22 = vadd.f32 %v1127_v45, %v934_v17 }
 0x178   : > { %v936_v19 = vpop.f32.mrf.mxu0 }
 0x179   : > { %3068 = vst [vmem:[#allocation3 + $0x58] sm:$0xff] %v3021_v18   ;;  %v1130_v26 = vadd.f32 %v1129_v47, %v936_v19  ;;  %v1159_v47 = vpop.f32.mrf.mxu1 }
 0x17a   : > { %v938_v21 = vpop.f32.mrf.mxu0 }
 0x17b   : > { %v1132_v23 = vadd.f32 %v1131_v51, %v938_v21  ;;  %v1161_v54 = vpop.f32.mrf.mxu1 }
 0x17c   : > { %v940_v24 = vpop.f32.mrf.mxu0 }
 0x17d   : > { %v2946_v27 = vpack.c.bf16 %v1132_v23, %v1128_v22  ;;  %v1134_v29 = vadd.f32 %v1133_v55, %v940_v24 }
 0x17e   : > { %v944_v28 = vpop.f32.mrf.mxu0 }
 0x17f   : > { %3054 = vst [vmem:[#allocation2 + $0x60] sm:$0xff] %v2946_v27   ;;  %v3026_v30 = vpack.c.bf16 %v1134_v29, %v1130_v26  ;;  %v1138_v34 = vadd.f32 %v1137_v59, %v944_v28  ;;  %v1163_v59 = vpop.f32.mrf.mxu1 }
 0x180   : > { %v946_v31 = vpop.f32.mrf.mxu0 }
 0x181   : > { %3069 = vst [vmem:[#allocation3 + $0x60] sm:$0xff] %v3026_v30   ;;  %v1140_v37 = vadd.f32 %v1139_v63, %v946_v31 }
 0x182   : > { %v948_v33 = vpop.f32.mrf.mxu0 }
 0x183   : > { %v1142_v35 = vadd.f32 %v1141_v8, %v948_v33 }
 0x184   : > { %v950_v36 = vpop.f32.mrf.mxu0 }
 0x185   : > { %v2951_v38 = vpack.c.bf16 %v1142_v35, %v1138_v34  ;;  %v1144_v39 = vadd.f32 %v1143_v13, %v950_v36 }
 0x186   : > { %v954_v40 = vpop.f32.mrf.mxu0 }
 0x187   : > { %3055 = vst [vmem:[#allocation2 + $0x68] sm:$0xff] %v2951_v38   ;;  %v3031_v42 = vpack.c.bf16 %v1144_v39, %v1140_v37  ;;  %v1148_v45 = vadd.f32 %v1147_v20, %v954_v40 }
 0x188   : > { %v956_v41 = vpop.f32.mrf.mxu0 }
 0x189   : > { %3070 = vst [vmem:[#allocation3 + $0x68] sm:$0xff] %v3031_v42   ;;  %v1150_v50 = vadd.f32 %v1149_v25, %v956_v41 }
 0x18a   : > { %v958_v44 = vpop.f32.mrf.mxu0 }
 0x18b   : > { %v1152_v46 = vadd.f32 %v1151_v32, %v958_v44 }
 0x18c   : > { %v960_v48 = vpop.f32.mrf.mxu0 }
 0x18d   : > { %v2956_v49 = vpack.c.bf16 %v1152_v46, %v1148_v45  ;;  %v1154_v51 = vadd.f32 %v1153_v2, %v960_v48 }
 0x18e   : > { %v964_v52 = vpop.f32.mrf.mxu0 }
 0x18f   : > { %3056 = vst [vmem:[#allocation2 + $0x70] sm:$0xff] %v2956_v49   ;;  %v3036_v53 = vpack.c.bf16 %v1154_v51, %v1150_v50  ;;  %v1158_v57 = vadd.f32 %v1157_v43, %v964_v52 }
 0x190   : > { %v966_v56 = vpop.f32.mrf.mxu0 }
 0x191   : > { %3071 = vst [vmem:[#allocation3 + $0x70] sm:$0xff] %v3036_v53   ;;  %v1160_v61 = vadd.f32 %v1159_v47, %v966_v56 }
 0x192   : > { %v968_v55 = vpop.f32.mrf.mxu0 }
 0x193   : > { %v1162_v58 = vadd.f32 %v1161_v54, %v968_v55 }
 0x194   : > { %v970_v60 = vpop.f32.mrf.mxu0 }
 0x195   : > { %v2961_v62 = vpack.c.bf16 %v1162_v58, %v1158_v57  ;;  %v1164_v0 = vadd.f32 %v1163_v59, %v970_v60 }
 0x197   : > { %3057 = vst [vmem:[#allocation2 + $0x78] sm:$0xff] %v2961_v62   ;;  %v3041_v63 = vpack.c.bf16 %v1164_v0, %v1160_v61 }
 0x199   : > { %3072 = vst [vmem:[#allocation3 + $0x78] sm:$0xff] %v3041_v63  }
 0x19a PF: > { %v3391_v1 = vld [vmem:[%s4098_s1 + $0x168] ss:$12 sps:$4 sm:$0xff]   ;;  %v3394_v5 = vld [vmem:[%s4098_s1 + $0x150] ss:$12 sps:$4 sm:$0xff]   ;;  %v3397_v8 = vld [vmem:[%s4098_s1 + $0x138] ss:$12 sps:$4 sm:$0xff]  }
 0x19b   : > { %v3392_v3 = vld [vmem:[%s4098_s1 + $0x228] ss:$12 sps:$4 sm:$0xff]   ;;  %3073 = vmatprep.subr.bf16.mxu0 %v3391_v1  ;;  %v3395_v6 = vld [vmem:[%s4098_s1 + $0x210] ss:$12 sps:$4 sm:$0xff]   ;;  %v3398_v9 = vld [vmem:[%s4098_s1 + $0x1f8] ss:$12 sps:$4 sm:$0xff]  }
 0x19c   : > { %v3393_v4 = vld [vmem:[%s4098_s1 + $0xa8] ss:$12 sps:$4 sm:$0xff]   ;;  %3189 = vmatprep.subr.bf16.mxu1 %v3392_v3  ;;  %v3396_v7 = vld [vmem:[%s4098_s1 + $0x90] ss:$12 sps:$4 sm:$0xff]   ;;  %v3399_v10 = vld [vmem:[%s4098_s1 + $0x78] ss:$12 sps:$4 sm:$0xff]  }
 0x19d   : > { %3074 = vmatpush3.bf16.msra.mxu0 %v3393_v4  ;;  %3190 = vmatpush3.bf16.msra.mxu1 %v3392_v3  ;;  %v3400_v11 = vld [vmem:[%s4098_s1 + $0x120] ss:$12 sps:$4 sm:$0xff]   ;;  %v3403_v15 = vld [vmem:[%s4098_s1 + $0x108] ss:$12 sps:$4 sm:$0xff]   ;;  %v3406_v17 = vld [vmem:[%s4098_s1 + $0xf0] ss:$12 sps:$4 sm:$0xff]  }
 0x19e   : > { %3075 = vmatprep.subr.bf16.mxu0 %v3394_v5  ;;  %3191 = vmatprep.subr.bf16.mxu1 %v3395_v6  ;;  %v3401_v12 = vld [vmem:[%s4098_s1 + $0x1e0] ss:$12 sps:$4 sm:$0xff]   ;;  %v3404_v14 = vld [vmem:[%s4098_s1 + $0x1c8] ss:$12 sps:$4 sm:$0xff]   ;;  %v3407_v18 = vld [vmem:[%s4098_s1 + $0x1b0] ss:$12 sps:$4 sm:$0xff]  }
 0x19f   : > { %v3402_v13 = vld [vmem:[%s4098_s1 + $0x60] ss:$12 sps:$4 sm:$0xff]   ;;  %v3405_v16 = vld [vmem:[%s4098_s1 + $0x48] ss:$12 sps:$4 sm:$0xff]   ;;  %v3408_v19 = vld [vmem:[%s4098_s1 + $0x30] ss:$12 sps:$4 sm:$0xff]  }
 0x1a0   : > { %v3409_v20 = vld [vmem:[%s4098_s1 + $0xd8] ss:$12 sps:$4 sm:$0xff]   ;;  %v3412_v23 = vld [vmem:[%s4098_s1 + $0xc0] ss:$12 sps:$4 sm:$0xff]   ;;  %s2746_s29 = sshll.u32 %s3533_s9, 6  ;;  %v3433_v33 = vld [vmem:[#allocation2 + $0x70] sm:$0xff]  }
 0x1a1   : > { %3076 = vmatpush3.bf16.msra.mxu0 %v3396_v7  ;;  %3192 = vmatpush3.bf16.msra.mxu1 %v3395_v6  ;;  %v3410_v21 = vld [vmem:[%s4098_s1 + $0x198] ss:$12 sps:$4 sm:$0xff]   ;;  %v3413_v24 = vld [vmem:[%s4098_s1 + $0x180] ss:$12 sps:$4 sm:$0xff]   ;;  %s1487_s30 = sshra.s32 %s2746_s29, 3  ;;  %v3434_v37 = vld [vmem:[#allocation2 + $0x30] sm:$0xff]  }
 0x1a2   : > { %3077 = vmatprep.subr.bf16.mxu0 %v3397_v8  ;;  %3193 = vmatprep.subr.bf16.mxu1 %v3398_v9  ;;  %v3411_v22 = vld [vmem:[%s4098_s1 + $0x18] ss:$12 sps:$4 sm:$0xff]   ;;  %s2882_s3 = smul.u32 12, %s1487_s30  ;;  %v3414_v25 = vld [vmem:[%s4098_s1] ss:$12 sps:$4 sm:$0xff]   ;;  %v3441_v47 = vld [vmem:[#allocation2 + $0x50] sm:$0xff]  }
 0x1a3   : > { %v3431_v26 = vld [vmem:[#allocation2 + $0x78] sm:$0xff]   ;;  %v3435_v38 = vld [vmem:[#allocation2 + $0x68] sm:$0xff]   ;;  %v3437_v41 = vld [vmem:[#allocation2 + $0x60] sm:$0xff]  }
 0x1a4   : > { %s3895_s6 = scalar_lea.vmem %s3603_s22, %s2882_s3  ;;  %v3432_v30 = vld [vmem:[#allocation2 + $0x38] sm:$0xff]   ;;  %v3436_v42 = vld [vmem:[#allocation2 + $0x28] sm:$0xff]   ;;  %v3438_v44 = vld [vmem:[#allocation2 + $0x20] sm:$0xff]  }
 0x1a5   : > { %3078 = vmatpush3.bf16.msra.mxu0 %v3399_v10  ;;  %3194 = vmatpush3.bf16.msra.mxu1 %v3398_v9  ;;  %v3415_v27 = vld [vmem:[%s3895_s6] ss:$12 sps:$4 sm:$0xff]   ;;  %v3417_v29 = vld [vmem:[%s3895_s6 + $0x4] ss:$12 sps:$4 sm:$0xff]   ;;  %v3418_v28 = vld [vmem:[%s3895_s6 + $0x8] ss:$12 sps:$4 sm:$0xff]  }
 0x1a6   : > { %3079 = vmatprep.subr.bf16.mxu0 %v3400_v11  ;;  %3195 = vmatprep.subr.bf16.mxu1 %v3401_v12  ;;  %v3419_v31 = vld [vmem:[%s3895_s6 + $0x20] ss:$12 sps:$4 sm:$0xff]   ;;  %v3420_v32 = vld [vmem:[%s3895_s6 + $0x1c] ss:$12 sps:$4 sm:$0xff]   ;;  %v3423_v34 = vld [vmem:[%s3895_s6 + $0x38] ss:$12 sps:$4 sm:$0xff]  }
 0x1a7   : > { %1796 = vmatprep.mubr.bf16.mxu0 %v3417_v29  ;;  %3205 = vmatprep.mubr.bf16.mxu1 %v3418_v28  ;;  %v3422_v35 = vld [vmem:[%s3895_s6 + $0x18] ss:$12 sps:$4 sm:$0xff]   ;;  %v3424_v36 = vld [vmem:[%s3895_s6 + $0x50] ss:$12 sps:$4 sm:$0xff]   ;;  %v3425_v2 = vld [vmem:[%s3895_s6 + $0x34] ss:$12 sps:$4 sm:$0xff]  }
 0x1a8   : > { %v3427_v39 = vld [vmem:[%s3895_s6 + $0x30] ss:$12 sps:$4 sm:$0xff]   ;;  %v3428_v40 = vld [vmem:[%s3895_s6 + $0x4c] ss:$12 sps:$4 sm:$0xff]   ;;  %v3430_v43 = vld [vmem:[%s3895_s6 + $0x48] ss:$12 sps:$4 sm:$0xff]  }
 0x1a9   : > { %3080 = vmatpush3.bf16.msra.mxu0 %v3402_v13  ;;  %3196 = vmatpush3.bf16.msra.mxu1 %v3401_v12  ;;  %v3439_v45 = vld [vmem:[#allocation2 + $0x58] sm:$0xff]   ;;  %v3442_v48 = vld [vmem:[#allocation2 + $0x10] sm:$0xff]   ;;  %v3443_v50 = vld [vmem:[#allocation2 + $0x48] sm:$0xff]  }
 0x1aa   : > { %3081 = vmatprep.subr.bf16.mxu0 %v3403_v15  ;;  %3197 = vmatprep.subr.bf16.mxu1 %v3404_v14  ;;  %v3440_v46 = vld [vmem:[#allocation2 + $0x18] sm:$0xff]   ;;  %v3444_v49 = vld [vmem:[#allocation2 + $0x8] sm:$0xff]   ;;  %v3445_v51 = vld [vmem:[#allocation2 + $0x40] sm:$0xff]  }
 0x1ab   : > { %v3446_v52 = vld [vmem:[#allocation2] sm:$0xff]  }
 0x1ad   : > { %3082 = vmatpush3.bf16.msra.mxu0 %v3405_v16  ;;  %3198 = vmatpush3.bf16.msra.mxu1 %v3404_v14 }
 0x1ae   : > { %3083 = vmatprep.subr.bf16.mxu0 %v3406_v17  ;;  %3199 = vmatprep.subr.bf16.mxu1 %v3407_v18 }
 0x1b1   : > { %3084 = vmatpush3.bf16.msra.mxu0 %v3408_v19  ;;  %3200 = vmatpush3.bf16.msra.mxu1 %v3407_v18 }
 0x1b2   : > { %3085 = vmatprep.subr.bf16.mxu0 %v3409_v20  ;;  %3201 = vmatprep.subr.bf16.mxu1 %v3410_v21 }
 0x1b5   : > { %3086 = vmatpush3.bf16.msra.mxu0 %v3411_v22  ;;  %3202 = vmatpush3.bf16.msra.mxu1 %v3410_v21 }
 0x1b6   : > { %3087 = vmatprep.subr.bf16.mxu0 %v3412_v23  ;;  %3203 = vmatprep.subr.bf16.mxu1 %v3413_v24 }
 0x1b9   : > { %3088 = vmatpush3.bf16.msra.mxu0 %v3414_v25  ;;  %3204 = vmatpush3.bf16.msra.mxu1 %v3413_v24 }
 0x1ba   : > { %3125 = vmatprep.subr.bf16.mxu0 %v3431_v26 }
 0x1bc   : > { %1797 = vmatmul.mubr.bf16.vlgmr.msra.gmra.mxu0 %v3415_v27  ;;  %3206 = vmatmul.mubr.bf16.vlgmr.msra.gmra.mxu1 %v3419_v31 }
 0x1bd   : > { %1804 = vmatprep.mubr.bf16.mxu0 %v3420_v32  ;;  %3209 = vmatprep.mubr.bf16.mxu1 %v3423_v34 }
 0x1be   : > { %3126 = vmatpush3.bf16.xpose.msra.mxu0 %v3432_v30 }
 0x1bf   : > { %3127 = vmatprep.subr.bf16.mxu0 %v3433_v33 }
 0x1c4   : > { %1805 = vmatmul.mubr.bf16.gmra.mxu0 %v3422_v35  ;;  %3210 = vmatmul.mubr.bf16.gmra.mxu1 %v3424_v36 }
 0x1c5   : > { %1812 = vmatprep.mubr.bf16.mxu0 %v3425_v2 }
 0x1c6   : > { %3128 = vmatpush3.bf16.xpose.msra.mxu0 %v3434_v37 }
 0x1c7   : > { %3129 = vmatprep.subr.bf16.mxu0 %v3435_v38 }
 0x1cc   : > { %1813 = vmatmul.mubr.bf16.gmra.mxu0 %v3427_v39 }
 0x1cd   : > { %1820 = vmatprep.mubr.bf16.mxu0 %v3428_v40 }
 0x1ce   : > { %3130 = vmatpush3.bf16.xpose.msra.mxu0 %v3436_v42  ;;  %v2107_v42 = vlaneseq }
 0x1cf   : > { %3131 = vmatprep.subr.bf16.mxu0 %v3437_v41 }
 0x1d0   : > { %v3909_v41 = vand.u32 127, %v2107_v42 }
 0x1d4   : > { %1821 = vmatmul.mubr.bf16.gmra.mxu0 %v3430_v43  ;;  %v2111_v43 = vshrl.u32 %v2107_v42, 7  ;;  %v3451_v42 = vld [vmem:[#allocation3 + $0x68] sm:$0xff]  }
 0x1d6   : > { %3132 = vmatpush3.bf16.xpose.msra.mxu0 %v3438_v44  ;;  %v3913_v44 = vstv %s2746_s29 }
 0x1d7   : > { %3133 = vmatprep.subr.bf16.mxu0 %v3439_v45  ;;  %v2120_v45 = vadd.s32 %v3913_v44, %v2111_v43 }
 0x1d9   : > { %vm2128_vm0 = vcmp.le.s32.totalorder %v3909_v41, %v2120_v45 }
 0x1de   : > { %3134 = vmatpush3.bf16.xpose.msra.mxu0 %v3440_v46  ;;  %v3917_v46 = vadd.s32 128, %v3909_v41 }
 0x1df   : > { %3135 = vmatprep.subr.bf16.mxu0 %v3441_v47  ;;  %v2112_v47 = vadd.s32 8, %v2111_v43 }
 0x1e0   : > { %vm2129_vm1 = vcmp.le.s32.totalorder %v3917_v46, %v2120_v45 }
 0x1e6   : > { %3136 = vmatpush3.bf16.xpose.msra.mxu0 %v3442_v48  ;;  %v2113_v48 = vadd.s32 16, %v2111_v43 }
 0x1e7   : > { %3137 = vmatprep.subr.bf16.mxu0 %v3443_v50 }
 0x1ee   : > { %3138 = vmatpush3.bf16.xpose.msra.mxu0 %v3444_v49  ;;  %v2121_v49 = vadd.s32 %v3913_v44, %v2112_v47 }
 0x1ef   : > { %3139 = vmatprep.subr.bf16.mxu0 %v3445_v51 }
 0x1f0   : > { %vm2130_vm2 = vcmp.le.s32.totalorder %v3909_v41, %v2121_v49  ;;  %vm2131_vm3 = vcmp.le.s32.totalorder %v3917_v46, %v2121_v49 }
 0x1f6   : > { %3140 = vmatpush3.bf16.xpose.msra.mxu0 %v3446_v52 }
 0x27c   : > { %v3089_v53 = vpop.f32.mrf.mxu0  ;;  %v3207_v54 = vpop.f32.mrf.mxu1 }
 0x27e   : > { %v3090_v56 = vpop.f32.mrf.mxu0  ;;  %v1863_v55 = vpop.f32.mrf.mxu1 }
 0x27f   : > { %v3091_v57 = vadd.f32 %v3090_v56, %v3089_v53 }
 0x280   : > { %v3092_v58 = vpop.f32.mrf.mxu0  ;;  %v3208_v59 = vpop.f32.mrf.mxu1 }
 0x281   : > { %v1864_v61 = vadd.f32 %v3091_v57, %v1863_v55  ;;  %v2114_v57 = vadd.s32 24, %v2111_v43 }
 0x282   : > { %v3093_v60 = vpop.f32.mrf.mxu0  ;;  %v1866_v0 = vpop.f32.mrf.mxu1 }
 0x283   : > { %v3094_v62 = vadd.f32 %v3093_v60, %v3092_v58  ;;  %v1894_v4 = vmul.f32 0.05103104, %v1864_v61 }
 0x284   : > { %v3095_v63 = vpop.f32.mrf.mxu0  ;;  %v3211_v8 = vpop.f32.mrf.mxu1 }
 0x285   : > { %v1867_v1 = vadd.f32 %v3094_v62, %v1866_v0  ;;  %v2123_v0 = vadd.s32 %v3913_v44, %v2114_v57 }
 0x286   : > { %v3096_v3 = vpop.f32.mrf.mxu0  ;;  %v1879_v13 = vpop.f32.mrf.mxu1 }
 0x287   : > { %v1895_v5 = vmul.f32 0.05103104, %v1867_v1  ;;  %v3097_v6 = vadd.f32 %v3096_v3, %v3095_v63  ;;  %v2115_v63 = vadd.s32 32, %v2111_v43  ;;  %vm2134_vm6 = vcmp.le.s32.totalorder %v3909_v41, %v2123_v0 }
 0x288   : > { %v3098_v7 = vpop.f32.mrf.mxu0  ;;  %v3212_v20 = vpop.f32.mrf.mxu1  ;;  %vm2135_vm7 = vcmp.le.s32.totalorder %v3917_v46, %v2123_v0 }
 0x289   : > { %v1902_v9 = vpack.c.bf16 %v1895_v5, %v1894_v4  ;;  %v1872_v11 = vadd.f32 %v3207_v54, %v3097_v6  ;;  %v2122_v54 = vadd.s32 %v3913_v44, %v2113_v48  ;;  %v2116_v5 = vadd.s32 40, %v2111_v43 }
 0x28a   : > { %v3099_v10 = vpop.f32.mrf.mxu0  ;;  %v1882_v26 = vpop.f32.mrf.mxu1 }
 0x28b   : > { %v3100_v12 = vadd.f32 %v3099_v10, %v3098_v7  ;;  %3141 = vmatprep.mubr.bf16.mxu0 %v1902_v9  ;;  %v1896_v17 = vmul.f32 0.05103104, %v1872_v11  ;;  %vm2132_vm4 = vcmp.le.s32.totalorder %v3909_v41, %v2122_v54  ;;  %vm2133_vm5 = vcmp.le.s32.totalorder %v3917_v46, %v2122_v54 }
 0x28c   : > { %v3101_v15 = vpop.f32.mrf.mxu0  ;;  %3142 = vmatmul.mubr.bf16.vlgmr.msra.gmra.mxu0 %v1902_v9 }
 0x28d   : > { %v1875_v14 = vadd.f32 %v3208_v59, %v3100_v12  ;;  %v2125_v12 = vadd.s32 %v3913_v44, %v2116_v5 }
 0x28e   : > { %v3102_v16 = vpop.f32.mrf.mxu0 }
 0x28f   : > { %v1897_v18 = vmul.f32 0.05103104, %v1875_v14  ;;  %v3103_v19 = vadd.f32 %v3102_v16, %v3101_v15  ;;  %v2117_v14 = vadd.s32 48, %v2111_v43  ;;  %vm2138_vm10 = vcmp.le.s32.totalorder %v3909_v41, %v2125_v12 }
 0x290   : > { %v3104_v21 = vpop.f32.mrf.mxu0  ;;  %vm2139_vm11 = vcmp.le.s32.totalorder %v3917_v46, %v2125_v12 }
 0x291   : > { %v1903_v22 = vpack.c.bf16 %v1897_v18, %v1896_v17  ;;  %v1880_v24 = vadd.f32 %v3103_v19, %v1879_v13 }
 0x292   : > { %v3105_v23 = vpop.f32.mrf.mxu0 }
 0x293   : > { %v3106_v25 = vadd.f32 %v3105_v23, %v3104_v21  ;;  %3143 = vmatprep.mubr.bf16.mxu0 %v1903_v22  ;;  %v1898_v30 = vmul.f32 0.05103104, %v1880_v24  ;;  %v2126_v21 = vadd.s32 %v3913_v44, %v2117_v14 }
 0x294   : > { %v3107_v27 = vpop.f32.mrf.mxu0  ;;  %3144 = vmatmul.mubr.bf16.gmra.mxu0 %v1903_v22  ;;  %v2118_v22 = vadd.s32 56, %v2111_v43 }
 0x295   : > { %v1883_v29 = vadd.f32 %v3106_v25, %v1882_v26  ;;  %vm2140_vm12 = vcmp.le.s32.totalorder %v3909_v41, %v2126_v21  ;;  %vm2141_vm13 = vcmp.le.s32.totalorder %v3917_v46, %v2126_v21 }
 0x296   : > { %v3108_v28 = vpop.f32.mrf.mxu0 }
 0x297   : > { %v1899_v31 = vmul.f32 0.05103104, %v1883_v29  ;;  %v3109_v32 = vadd.f32 %v3108_v28, %v3107_v27  ;;  %v2127_v29 = vadd.s32 %v3913_v44, %v2118_v22 }
 0x298   : > { %v3110_v33 = vpop.f32.mrf.mxu0 }
 0x299   : > { %v1904_v34 = vpack.c.bf16 %v1899_v31, %v1898_v30  ;;  %v1888_v36 = vadd.f32 %v3211_v8, %v3109_v32  ;;  %v2124_v8 = vadd.s32 %v3913_v44, %v2115_v63  ;;  %vm2142_vm14 = vcmp.le.s32.totalorder %v3909_v41, %v2127_v29 }
 0x29a   : > { %v3111_v35 = vpop.f32.mrf.mxu0  ;;  %vm2143_vm15 = vcmp.le.s32.totalorder %v3917_v46, %v2127_v29 }
 0x29b   : > { %v3112_v2 = vadd.f32 %v3111_v35, %v3110_v33  ;;  %3145 = vmatprep.mubr.bf16.mxu0 %v1904_v34  ;;  %v1900_v38 = vmul.f32 0.05103104, %v1888_v36  ;;  %vm2136_vm8 = vcmp.le.s32.totalorder %v3909_v41, %v2124_v8  ;;  %vm2137_vm9 = vcmp.le.s32.totalorder %v3917_v46, %v2124_v8 }
 0x29c   : > { %3146 = vmatmul.mubr.bf16.gmra.mxu0 %v1904_v34 }
 0x29d   : > { %v1891_v37 = vadd.f32 %v3212_v20, %v3112_v2 }
 0x29f   : > { %v1901_v39 = vmul.f32 0.05103104, %v1891_v37  ;;  %v3447_v37 = vld [vmem:[#allocation3 + $0x78] sm:$0xff]  }
 0x2a0   : > { %3149 = vmatprep.subr.bf16.mxu1 %v3447_v37 }
 0x2a1   : > { %v1905_v40 = vpack.c.bf16 %v1901_v39, %v1900_v38  ;;  %v3448_v38 = vld [vmem:[#allocation3 + $0x38] sm:$0xff]   ;;  %v3449_v39 = vld [vmem:[#allocation3 + $0x70] sm:$0xff]  }
 0x2a2   : > { %3150 = vmatpush3.bf16.msra.mxu1 %v3448_v38  ;;  %v3456_v38 = vld [vmem:[#allocation3 + $0x18] sm:$0xff]  }
 0x2a3   : > { %3147 = vmatprep.mubr.bf16.mxu0 %v1905_v40  ;;  %3151 = vmatprep.subr.bf16.mxu1 %v3449_v39 }
 0x2a4   : > { %3148 = vmatmul.mubr.bf16.gmra.mxu0 %v1905_v40  ;;  %v3450_v40 = vld [vmem:[#allocation3 + $0x30] sm:$0xff]  }
 0x2a6   : > { %3152 = vmatpush3.bf16.msra.mxu1 %v3450_v40 }
 0x2a7   : > { %3153 = vmatprep.subr.bf16.mxu1 %v3451_v42  ;;  %v3457_v42 = vld [vmem:[#allocation3 + $0x50] sm:$0xff]  }
 0x34c   : > { %v2068_v50 = vpop.f32.mrf.mxu0 }
 0x34d   : > { %v3922_v52 = vsel %vm2128_vm0, %v2068_v50, -inf  ;;  %vm2481_vm0 = vcmask 523264  }
 0x34e   : > { %v2070_v51 = vpop.f32.mrf.mxu0 }
 0x34f   : > { %v3924_v53 = vsel %vm2129_vm1, %v2070_v51, -inf }
 0x350   : > { %v2072_v56 = vpop.f32.mrf.mxu0  ;;  %v2160_v55 = vmax.f32 %v3922_v52, %v3924_v53 }
 0x351   : > { %v3931_v59 = vsel %vm2130_vm2, %v2072_v56, -inf }
 0x352   : > { %2161 = vmax.xlane.f32.xlu0 %v2160_v55  ;;  %v2074_v58 = vpop.f32.mrf.mxu0 }
 0x353   : > { %v3933_v60 = vsel %vm2131_vm3, %v2074_v58, -inf }
 0x354   : > { %v2078_v61 = vpop.f32.mrf.mxu0  ;;  %v2163_v62 = vmax.f32 %v3931_v59, %v3933_v60 }
 0x355   : > { %v3940_v3 = vsel %vm2132_vm4, %v2078_v61, -inf }
 0x356   : > { %2164 = vmax.xlane.f32.xlu0 %v2163_v62  ;;  %v2080_v1 = vpop.f32.mrf.mxu0 }
 0x357   : > { %v3942_v4 = vsel %vm2133_vm5, %v2080_v1, -inf }
 0x358   : > { %v2082_v6 = vpop.f32.mrf.mxu0  ;;  %v2166_v7 = vmax.f32 %v3940_v3, %v3942_v4 }
 0x359   : > { %v3949_v10 = vsel %vm2134_vm6, %v2082_v6, -inf }
 0x35a   : > { %2167 = vmax.xlane.f32.xlu1 %v2166_v7  ;;  %v2084_v9 = vpop.f32.mrf.mxu0 }
 0x35b   : > { %v3951_v11 = vsel %vm2135_vm7, %v2084_v9, -inf }
 0x35c   : > { %v2088_v13 = vpop.f32.mrf.mxu0  ;;  %v2169_v15 = vmax.f32 %v3949_v10, %v3951_v11 }
 0x35d   : > { %v3958_v17 = vsel %vm2136_vm8, %v2088_v13, -inf }
 0x35e   : > { %2170 = vmax.xlane.f32.xlu1 %v2169_v15  ;;  %v2090_v16 = vpop.f32.mrf.mxu0 }
 0x35f   : > { %v3960_v18 = vsel %vm2137_vm9, %v2090_v16, -inf }
 0x360   : > { %v2092_v19 = vpop.f32.mrf.mxu0  ;;  %v2172_v20 = vmax.f32 %v3958_v17, %v3960_v18 }
 0x361   : > { %v3967_v24 = vsel %vm2138_vm10, %v2092_v19, -inf }
 0x362   : > { %2173 = vmax.xlane.f32.xlu0 %v2172_v20  ;;  %v2094_v23 = vpop.f32.mrf.mxu0 }
 0x363   : > { %v3969_v25 = vsel %vm2139_vm11, %v2094_v23, -inf }
 0x364   : > { %v2098_v26 = vpop.f32.mrf.mxu0  ;;  %v2175_v27 = vmax.f32 %v3967_v24, %v3969_v25 }
 0x365   : > { %v3976_v30 = vsel %vm2140_vm12, %v2098_v26, -inf }
 0x366   : > { %2176 = vmax.xlane.f32.xlu1 %v2175_v27  ;;  %v2100_v28 = vpop.f32.mrf.mxu0  ;;  %v3452_v27 = vld [vmem:[#allocation3 + $0x28] sm:$0xff]  }
 0x367   : > { %v3978_v31 = vsel %vm2141_vm13, %v2100_v28, -inf  ;;  %3154 = vmatpush3.bf16.msra.mxu1 %v3452_v27 }
 0x368   : > { %v2102_v32 = vpop.f32.mrf.mxu0  ;;  %v2178_v33 = vmax.f32 %v3976_v30, %v3978_v31 }
 0x369   : > { %v3984_v35 = vsel %vm2142_vm14, %v2102_v32, -inf  ;;  %v3453_v32 = vld [vmem:[#allocation3 + $0x60] sm:$0xff]  }
 0x36a   : > { %2179 = vmax.xlane.f32.xlu0 %v2178_v33  ;;  %v2104_v34 = vpop.f32.mrf.mxu0  ;;  %3155 = vmatprep.subr.bf16.mxu1 %v3453_v32 }
 0x36b   : > { %v3986_v36 = vsel %vm2143_vm15, %v2104_v34, -inf  ;;  %v3454_v34 = vld [vmem:[#allocation3 + $0x20] sm:$0xff]  }
 0x36c   : > { %v2181_v2 = vmax.f32 %v3984_v35, %v3986_v36  ;;  %3156 = vmatpush3.bf16.msra.mxu1 %v3454_v34 }
 0x36e   : > { %2182 = vmax.xlane.f32.xlu1 %v2181_v2  ;;  %v3455_v2 = vld [vmem:[#allocation3 + $0x58] sm:$0xff]  }
 0x36f   : > { %3157 = vmatprep.subr.bf16.mxu1 %v3455_v2 }
 0x370   : > { %3158 = vmatpush3.bf16.msra.mxu1 %v3456_v38 }
 0x371   : > { %3159 = vmatprep.subr.bf16.mxu1 %v3457_v42 }
 0x3db   : > { %v2162_v41 = vpop.xlane.xlu0 %2161 }
 0x3dc   : > { %v2184_v43 = vsub.f32 %v3922_v52, %v2162_v41  ;;  %v2185_v44 = vsub.f32 %v3924_v53, %v2162_v41 }
 0x3de   : > { %v2200_v45 = vmul.f32 1.442695, %v2184_v43  ;;  %v2202_v46 = vmul.f32 1.442695, %v2185_v44  ;;  %v3458_v43 = vld [vmem:[#allocation3 + $0x10] sm:$0xff]  }
 0x3df   : > { %v2165_v47 = vpop.xlane.xlu0 %2164  ;;  %3160 = vmatpush3.bf16.msra.mxu1 %v3458_v43 }
 0x3e0   : > { %3463 = vpow2.f32 %v2200_v45  ;;  %v2186_v48 = vsub.f32 %v3931_v59, %v2165_v47  ;;  %v2187_v50 = vsub.f32 %v3933_v60, %v2165_v47 }
 0x3e1   : > { %3465 = vpow2.f32 %v2202_v46  ;;  %v3459_v46 = vld [vmem:[#allocation3 + $0x48] sm:$0xff]  }
 0x3e2   : > { %v2204_v49 = vmul.f32 1.442695, %v2186_v48  ;;  %v2206_v51 = vmul.f32 1.442695, %v2187_v50  ;;  %3161 = vmatprep.subr.bf16.mxu1 %v3459_v46  ;;  %v3460_v48 = vld [vmem:[#allocation3 + $0x8] sm:$0xff]  }
 0x3e3   : > { %v2168_v54 = vpop.xlane.xlu1 %2167  ;;  %3162 = vmatpush3.bf16.msra.mxu1 %v3460_v48 }
 0x3e4   : > { %3467 = vpow2.f32 %v2204_v49  ;;  %v2188_v56 = vsub.f32 %v3940_v3, %v2168_v54  ;;  %v2189_v55 = vsub.f32 %v3942_v4, %v2168_v54  ;;  %v3462_v54 = vld [vmem:[#allocation3] sm:$0xff]  }
 0x3e5   : > { %3469 = vpow2.f32 %v2206_v51  ;;  %v3461_v51 = vld [vmem:[#allocation3 + $0x40] sm:$0xff]  }
 0x3e6   : > { %v2208_v52 = vmul.f32 1.442695, %v2188_v56  ;;  %v2210_v53 = vmul.f32 1.442695, %v2189_v55  ;;  %3163 = vmatprep.subr.bf16.mxu1 %v3461_v51 }
 0x3e7   : > { %v2171_v57 = vpop.xlane.xlu1 %2170  ;;  %3164 = vmatpush3.bf16.msra.mxu1 %v3462_v54 }
 0x3e8   : > { %3471 = vpow2.f32 %v2208_v52  ;;  %v2190_v58 = vsub.f32 %v3949_v10, %v2171_v57  ;;  %v2191_v59 = vsub.f32 %v3951_v11, %v2171_v57 }
 0x3e9   : > { %3473 = vpow2.f32 %v2210_v53 }
 0x3ea   : > { %v2212_v60 = vmul.f32 1.442695, %v2190_v58  ;;  %v2214_v61 = vmul.f32 1.442695, %v2191_v59 }
 0x3eb   : > { %v2174_v62 = vpop.xlane.xlu0 %2173 }
 0x3ec   : > { %3475 = vpow2.f32 %v2212_v60  ;;  %v2192_v0 = vsub.f32 %v3958_v17, %v2174_v62  ;;  %v2193_v63 = vsub.f32 %v3960_v18, %v2174_v62 }
 0x3ed   : > { %v4000_v1 = vpop.eup %3463  ;;  %3477 = vpow2.f32 %v2214_v61 }
 0x3ee   : > { %v4002_v3 = vpop.eup %3465  ;;  %v2216_v4 = vmul.f32 1.442695, %v2192_v0  ;;  %v2218_v5 = vmul.f32 1.442695, %v2193_v63 }
 0x3ef   : > { %v2177_v6 = vpop.xlane.xlu1 %2176  ;;  %v2232_v7 = vadd.f32 %v4002_v3, %v4000_v1 }
 0x3f0   : > { %3479 = vpow2.f32 %v2216_v4  ;;  %v2194_v8 = vsub.f32 %v3967_v24, %v2177_v6  ;;  %v2195_v9 = vsub.f32 %v3969_v25, %v2177_v6 }
 0x3f1   : > { %v4008_v10 = vpop.eup %3467  ;;  %3481 = vpow2.f32 %v2218_v5  ;;  %2233 = vadd.xlane.f32.xlu0 %v2232_v7 }
 0x3f2   : > { %v4010_v11 = vpop.eup %3469  ;;  %v2220_v12 = vmul.f32 1.442695, %v2194_v8  ;;  %v2222_v13 = vmul.f32 1.442695, %v2195_v9 }
 0x3f3   : > { %v2180_v15 = vpop.xlane.xlu0 %2179  ;;  %v2235_v14 = vadd.f32 %v4010_v11, %v4008_v10 }
 0x3f4   : > { %3483 = vpow2.f32 %v2220_v12  ;;  %v2196_v16 = vsub.f32 %v3976_v30, %v2180_v15  ;;  %v2197_v17 = vsub.f32 %v3978_v31, %v2180_v15 }
 0x3f5   : > { %v4016_v18 = vpop.eup %3471  ;;  %3485 = vpow2.f32 %v2222_v13  ;;  %2236 = vadd.xlane.f32.xlu1 %v2235_v14 }
 0x3f6   : > { %v4018_v19 = vpop.eup %3473  ;;  %v2224_v20 = vmul.f32 1.442695, %v2196_v16  ;;  %v2226_v21 = vmul.f32 1.442695, %v2197_v17 }
 0x3f7   : > { %v2183_v22 = vpop.xlane.xlu1 %2182  ;;  %v2238_v23 = vadd.f32 %v4018_v19, %v4016_v18 }
 0x3f8   : > { %3487 = vpow2.f32 %v2224_v20  ;;  %v2198_v24 = vsub.f32 %v3984_v35, %v2183_v22  ;;  %v2199_v25 = vsub.f32 %v3986_v36, %v2183_v22 }
 0x3f9   : > { %v4024_v26 = vpop.eup %3475  ;;  %3489 = vpow2.f32 %v2226_v21  ;;  %2239 = vadd.xlane.f32.xlu0 %v2238_v23 }
 0x3fa   : > { %v4026_v29 = vpop.eup %3477  ;;  %v2228_v28 = vmul.f32 1.442695, %v2198_v24  ;;  %v2230_v30 = vmul.f32 1.442695, %v2199_v25 }
 0x3fb   : > { %v2241_v31 = vadd.f32 %v4026_v29, %v4024_v26 }
 0x3fc   : > { %3491 = vpow2.f32 %v2228_v28 }
 0x3fd   : > { %v4030_v33 = vpop.eup %3479  ;;  %3493 = vpow2.f32 %v2230_v30  ;;  %2242 = vadd.xlane.f32.xlu1 %v2241_v31 }
 0x3fe   : > { %v4032_v35 = vpop.eup %3481 }
 0x3ff   : > { %v2244_v36 = vadd.f32 %v4032_v35, %v4030_v33 }
 0x401   : > { %v4036_v37 = vpop.eup %3483  ;;  %2245 = vadd.xlane.f32.xlu0 %v2244_v36 }
 0x402   : > { %v4038_v39 = vpop.eup %3485 }
 0x403   : > { %v2247_v40 = vadd.f32 %v4038_v39, %v4036_v37 }
 0x405   : > { %v4042_v41 = vpop.eup %3487  ;;  %2248 = vadd.xlane.f32.xlu1 %v2247_v40 }
 0x406   : > { %v4044_v44 = vpop.eup %3489 }
 0x407   : > { %v2250_v45 = vadd.f32 %v4044_v44, %v4042_v41 }
 0x409   : > { %v4048_v47 = vpop.eup %3491  ;;  %2251 = vadd.xlane.f32.xlu0 %v2250_v45 }
 0x40a   : > { %v3494_v50 = vpop.eup %3493 }
 0x40b   : > { %v2253_v49 = vadd.f32 %v3494_v50, %v4048_v47 }
 0x40d   : > { %2254 = vadd.xlane.f32.xlu1 %v2253_v49 }
 0x47a   : > { %v2234_v56 = vpop.xlane.xlu0 %2233 }
 0x47b   : > { %3495 = vrcp.f32 %v2234_v56 }
 0x47e   : > { %v2237_v55 = vpop.xlane.xlu1 %2236 }
 0x47f   : > { %3497 = vrcp.f32 %v2237_v55 }
 0x482   : > { %v2240_v52 = vpop.xlane.xlu0 %2239 }
 0x483   : > { %3499 = vrcp.f32 %v2240_v52 }
 0x486   : > { %v2243_v53 = vpop.xlane.xlu1 %2242 }
 0x487   : > { %3501 = vrcp.f32 %v2243_v53 }
 0x488   : > { %v3496_v57 = vpop.eup %3495 }
 0x489   : > { %v2265_v60 = vmul.f32 %v3496_v57, %v4002_v3  ;;  %v2264_v62 = vmul.f32 %v3496_v57, %v4000_v1 }
 0x48a   : > { %v2246_v58 = vpop.xlane.xlu0 %2245 }
 0x48b   : > { %3503 = vrcp.f32 %v2246_v58 }
 0x48c   : > { %v3498_v59 = vpop.eup %3497 }
 0x48d   : > { %v2267_v61 = vmul.f32 %v3498_v59, %v4010_v11  ;;  %v2266_v0 = vmul.f32 %v3498_v59, %v4008_v10 }
 0x48e   : > { %v2249_v63 = vpop.xlane.xlu1 %2248 }
 0x48f   : > { %3505 = vrcp.f32 %v2249_v63  ;;  %v2281_v4 = vpack.c.bf16 %v2267_v61, %v2265_v60  ;;  %v2280_v5 = vpack.c.bf16 %v2266_v0, %v2264_v62 }
 0x490   : > { %v3500_v6 = vpop.eup %3499 }
 0x491   : > { %2448 = vmatprep.mubr.bf16.mxu1 %v2281_v4  ;;  %v2269_v9 = vmul.f32 %v3500_v6, %v4018_v19  ;;  %v2268_v11 = vmul.f32 %v3500_v6, %v4016_v18 }
 0x492   : > { %v2252_v7 = vpop.xlane.xlu0 %2251  ;;  %2449 = vmatmul.mubr.bf16.vlgmr.msra.gmra.mxu1 %v2280_v5 }
 0x493   : > { %3507 = vrcp.f32 %v2252_v7 }
 0x494   : > { %v3502_v8 = vpop.eup %3501 }
 0x495   : > { %v2271_v3 = vmul.f32 %v3502_v8, %v4026_v29  ;;  %v2270_v1 = vmul.f32 %v3502_v8, %v4024_v26 }
 0x496   : > { %v2255_v12 = vpop.xlane.xlu1 %2254 }
 0x497   : > { %3509 = vrcp.f32 %v2255_v12  ;;  %v2283_v10 = vpack.c.bf16 %v2271_v3, %v2269_v9  ;;  %v2282_v13 = vpack.c.bf16 %v2270_v1, %v2268_v11 }
 0x498   : > { %v3504_v15 = vpop.eup %3503 }
 0x499   : > { %2456 = vmatprep.mubr.bf16.mxu1 %v2283_v10  ;;  %v2273_v16 = vmul.f32 %v3504_v15, %v4032_v35  ;;  %v2272_v19 = vmul.f32 %v3504_v15, %v4030_v33 }
 0x49a   : > { %2457 = vmatmul.mubr.bf16.gmra.mxu1 %v2282_v13 }
 0x49c   : > { %v3506_v14 = vpop.eup %3505 }
 0x49d   : > { %v2275_v17 = vmul.f32 %v3506_v14, %v4038_v39  ;;  %v2274_v20 = vmul.f32 %v3506_v14, %v4036_v37 }
 0x49f   : > { %v2285_v21 = vpack.c.bf16 %v2275_v17, %v2273_v16  ;;  %v2284_v18 = vpack.c.bf16 %v2274_v20, %v2272_v19 }
 0x4a0   : > { %v3508_v22 = vpop.eup %3507 }
 0x4a1   : > { %2464 = vmatprep.mubr.bf16.mxu1 %v2285_v21  ;;  %v2277_v24 = vmul.f32 %v3508_v22, %v4044_v44  ;;  %v2276_v26 = vmul.f32 %v3508_v22, %v4042_v41 }
 0x4a2   : > { %2465 = vmatmul.mubr.bf16.gmra.mxu1 %v2284_v18 }
 0x4a4   : > { %v3510_v23 = vpop.eup %3509 }
 0x4a5   : > { %v2279_v25 = vmul.f32 %v3510_v23, %v3494_v50  ;;  %v2278_v27 = vmul.f32 %v3510_v23, %v4048_v47 }
 0x4a7   : > { %v2287_v29 = vpack.c.bf16 %v2279_v25, %v2277_v24  ;;  %v2286_v28 = vpack.c.bf16 %v2278_v27, %v2276_v26 }
 0x4a9   : > { %2472 = vmatprep.mubr.bf16.mxu1 %v2287_v29 }
 0x4aa   : > { %2473 = vmatmul.mubr.bf16.gmra.mxu1 %v2286_v28 }
 0x552   : > { %v3165_v30 = vpop.f32.mrf.mxu1 }
 0x554   : > { %v3166_v31 = vpop.f32.mrf.mxu1 }
 0x555   : > { %v3167_v32 = vadd.f32 %v3166_v31, %v3165_v30 }
 0x556   : > { %v3168_v33 = vpop.f32.mrf.mxu1 }
 0x557   : > { %2482 = vst.msk [vmem:[%s3608_s26] sm:$0xff] %vm2481_vm0, %v3167_v32 }
 0x558   : > { %v3169_v34 = vpop.f32.mrf.mxu1 }
 0x559   : > { %v3170_v35 = vadd.f32 %v3169_v34, %v3168_v33 }
 0x55a   : > { %v3171_v36 = vpop.f32.mrf.mxu1 }
 0x55b   : > { %2483 = vst.msk [vmem:[%s3608_s26 + $0x8] sm:$0xff] %vm2481_vm0, %v3170_v35 }
 0x55c   : > { %v3172_v2 = vpop.f32.mrf.mxu1 }
 0x55d   : > { %v3173_v37 = vadd.f32 %v3172_v2, %v3171_v36 }
 0x55e   : > { %v3174_v38 = vpop.f32.mrf.mxu1 }
 0x55f   : > { %2484 = vst.msk [vmem:[%s3608_s26 + $0x10] sm:$0xff] %vm2481_vm0, %v3173_v37 }
 0x560   : > { %v3175_v39 = vpop.f32.mrf.mxu1 }
 0x561   : > { %v3176_v40 = vadd.f32 %v3175_v39, %v3174_v38 }
 0x562   : > { %v3177_v42 = vpop.f32.mrf.mxu1 }
 0x563   : > { %2485 = vst.msk [vmem:[%s3608_s26 + $0x18] sm:$0xff] %vm2481_vm0, %v3176_v40 }
 0x564   : > { %v3178_v41 = vpop.f32.mrf.mxu1 }
 0x565   : > { %v3179_v43 = vadd.f32 %v3178_v41, %v3177_v42 }
 0x566   : > { %v3180_v44 = vpop.f32.mrf.mxu1 }
 0x567   : > { %2486 = vst.msk [vmem:[%s3608_s26 + $0x20] sm:$0xff] %vm2481_vm0, %v3179_v43 }
 0x568   : > { %v3181_v45 = vpop.f32.mrf.mxu1 }
 0x569   : > { %v3182_v46 = vadd.f32 %v3181_v45, %v3180_v44 }
 0x56a   : > { %v3183_v47 = vpop.f32.mrf.mxu1 }
 0x56b   : > { %2487 = vst.msk [vmem:[%s3608_s26 + $0x28] sm:$0xff] %vm2481_vm0, %v3182_v46 }
 0x56c   : > { %v3184_v48 = vpop.f32.mrf.mxu1 }
 0x56d   : > { %v3185_v50 = vadd.f32 %v3184_v48, %v3183_v47 }
 0x56e   : > { %v3186_v49 = vpop.f32.mrf.mxu1 }
 0x56f   : > { %2488 = vst.msk [vmem:[%s3608_s26 + $0x30] sm:$0xff] %vm2481_vm0, %v3185_v50 }
 0x570   : > { %v3187_v51 = vpop.f32.mrf.mxu1 }
 0x571   : > { %v3188_v54 = vadd.f32 %v3187_v51, %v3186_v49 }
 0x573   : > { %2489 = vst.msk [vmem:[%s3608_s26 + $0x38] sm:$0xff] %vm2481_vm0, %v3188_v54 }
 0x574 PF: > { %s12_s13 = sadd.s32 1, %s3549_s13   ;;  %s4100_s9 = smov %s3541_s11 }
 0x575   : > { %p9_p8 = scmp.ge.s32.totalorder %s12_s13, 10   ;;  %s4101_s10 = smov %s3545_s12 }
 0x576   : > { %s4102_s11 = smov %s4105_s14  ;;  %s4103_s12 = smov %s4109_s15 }
 0x577   :  { %11 = sbr.rel (!%p9_p8) target bundleno = 3 (0x3), region = 63 }

</bundles_post_ra>
